<compile_context>
chip_gen: v5e
topology: v5e:2x2
jax: 0.10.0
libtpu: 0.0.40
codegen_flags: <defaults>
</compile_context>

<pallas_src>
import functools
import math

import jax
import jax.numpy as jnp
from jax import lax
from jax.experimental import pallas as pl
from jax.experimental.pallas import tpu as pltpu


# ----------------------------- activation helpers -----------------------------

def _mish_stable(x):
    # Reference-quality Mish: x * tanh(softplus(x)) with stable softplus.
    sp = jnp.maximum(x, 0.0) + jnp.log1p(jnp.exp(-jnp.abs(x)))
    return x * jnp.tanh(sp)


def _mish_fast(x):
    # Mish with ONE transcendental per element (EUP relief):
    #   tanh(softplus(x)) = ((1+e^x)^2 - 1) / ((1+e^x)^2 + 1) = e(e+2) / (e(e+2)+2)
    # For x > 20, mish(x) == x to f32 precision (also guards e^2 overflow).
    e = jnp.exp(x)
    n = e * (e + 2.0)
    y = x * (n / (n + 2.0))
    return jnp.where(x > 20.0, x, y)


# ------------------------------- kernel pieces --------------------------------

def _conv1d_same_from_padded(xpad_ref, w_ref, b_ref, T):
    """'same' conv from a T-padded ref.

    xpad_ref: (Bblk, T + 2*pad, Cin) ref (zero-padded rows at both ends per sample)
    w_ref:    (K, Cin, Cout) ref;  b_ref: (1, Cout) ref
    returns:  (Bblk, T, Cout) f32 value
    """
    K = w_ref.shape[0]
    Cin = w_ref.shape[1]
    Cout = w_ref.shape[2]
    Bblk = xpad_ref.shape[0]
    acc = None
    for k in range(K):                                  # K static (3) -> unrolled
        xk = xpad_ref[:, k:k + T, :]                    # (Bblk, T, Cin) tap window
        y = jnp.dot(xk.reshape(Bblk * T, Cin), w_ref[k],
                    preferred_element_type=jnp.float32) # M = Bblk*T on the MXU
        acc = y if acc is None else acc + y
    acc = acc + b_ref[...].astype(jnp.float32)
    return acc.reshape(Bblk, T, Cout)


def _group_norm(y, a_ref, at_ref, gamma_ref, beta_ref, inv_n, eps):
    """GroupNorm over (T, channels-in-group), per sample. y: (Bblk, T, C) f32."""
    bblk = y.shape[0]
    s1 = jnp.sum(y, axis=1)                             # (Bblk, C)
    s2 = jnp.sum(y * y, axis=1)                         # (Bblk, C)
    stats = jnp.concatenate([s1, s2], axis=0)           # (2*Bblk, C) -> one dot chain
    g = jnp.dot(jnp.dot(stats, a_ref[...], preferred_element_type=jnp.float32),
                at_ref[...], preferred_element_type=jnp.float32)   # (2*Bblk, C)
    mean = g[:bblk] * inv_n                             # (Bblk, C)
    var = g[bblk:] * inv_n - mean * mean                # biased var (PyTorch GN)
    inv = lax.rsqrt(var + eps)                          # EUP slot
    gamma = gamma_ref[...].astype(jnp.float32)          # (1, C)
    beta = beta_ref[...].astype(jnp.float32)
    return (y - mean[:, None, :]) * inv[:, None, :] * gamma + beta


def _residual_block_kernel(*refs, T, pad, use_film, has_res, inv_n, eps):
    it = iter(refs)
    x_ref = next(it)                                    # (Bblk, T+2p, Cin)
    scale_ref = next(it) if use_film else None          # (Bblk, 1, Cout) f32
    bias_ref = next(it)                                 # (Bblk, 1, Cout) f32
    w1_ref, b1_ref, gn1g_ref, gn1b_ref = next(it), next(it), next(it), next(it)
    w2_ref, b2_ref, gn2g_ref, gn2b_ref = next(it), next(it), next(it), next(it)
    a_ref, at_ref = next(it), next(it)                  # (C, G), (G, C)
    if has_res:
        wr_ref, br_ref = next(it), next(it)             # (Cin, Cout), (1, Cout)
    o_ref = next(it)                                    # (Bblk, T, Cout)
    hpad_ref = next(it)                                 # scratch (Bblk, T+2p, Cout)

    Bblk = o_ref.shape[0]
    Cout = o_ref.shape[2]

    # --- block 1: Conv1d -> GroupNorm -> Mish ---
    h = _conv1d_same_from_padded(x_ref, w1_ref, b1_ref, T)          # f32
    h = _group_norm(h, a_ref, at_ref, gn1g_ref, gn1b_ref, inv_n, eps)
    h = _mish_fast(h)

    # --- FiLM conditioning (cond MLP hoisted to the wrapper) ---
    if use_film:                                        # static flag
        h = h * scale_ref[...] + bias_ref[...]
    else:
        h = h + bias_ref[...]

    # --- block 2: Conv1d -> GroupNorm -> Mish (padded VMEM scratch, no concats) ---
    hpad_ref[:, :pad, :] = jnp.zeros((Bblk, pad, Cout), hpad_ref.dtype)
    hpad_ref[:, pad + T:, :] = jnp.zeros((Bblk, pad, Cout), hpad_ref.dtype)
    hpad_ref[:, pad:pad + T, :] = h.astype(hpad_ref.dtype)

    h = _conv1d_same_from_padded(hpad_ref, w2_ref, b2_ref, T)
    h = _group_norm(h, a_ref, at_ref, gn2g_ref, gn2b_ref, inv_n, eps)
    h = _mish_fast(h)

    # --- residual path (static branch: identity vs 1x1 conv) ---
    x_center = x_ref[:, pad:pad + T, :]                 # (Bblk, T, Cin)
    if has_res:
        Cin = x_center.shape[2]
        res = jnp.dot(x_center.reshape(Bblk * T, Cin), wr_ref[...],
                      preferred_element_type=jnp.float32)
        res = (res + br_ref[...].astype(jnp.float32)).reshape(Bblk, T, Cout)
    else:
        res = x_center.astype(jnp.float32)

    o_ref[...] = (h + res).astype(o_ref.dtype)


# --------------------------------- wrapper -------------------------------------

def _vmem_limit_bytes():
    try:
        cap = int(pltpu.get_tpu_info().vmem_capacity_bytes)
    except Exception:
        cap = 64 * 1024 * 1024
    # ~75% of device VMEM (raises the limit on 128 MiB v5e/v6e, stays safe on v7x).
    return int(max(32 * 1024 * 1024, min(int(cap * 0.75), 100 * 1024 * 1024)))


def _pick_block_batch(B, T, target_rows=256):
    """Largest divisor of B with Bblk*T <= ~target_rows; prefer grid length >= 2."""
    target = max(1, target_rows // max(1, T))
    divs = [d for d in range(1, B + 1) if B % d == 0 and d <= target]
    bblk = max(divs) if divs else 1
    if B // bblk < 2:
        smaller = [d for d in divs if B // d >= 2]
        if smaller:
            bblk = max(smaller)
    return bblk


def diffusion_conditional_residual_block_1d(
    x, cond, params, *, n_groups=8, use_film_scale_modulation=False,
    eps=1e-5, compute_dtype=None, block_batch=None):
    """x: (B, in_channels, T), cond: (B, cond_dim) -> (B, out_channels, T)."""
    B, Cin, T = x.shape
    _, cond_dim = cond.shape
    w1 = params["conv1_w"]
    K, _, Cout = w1.shape
    assert K % 2 == 1, "kernel_size must be odd for 'same' padding"
    assert Cout % n_groups == 0
    gs = Cout // n_groups
    pad = K // 2
    has_res = "res_w" in params
    use_film = use_film_scale_modulation
    cdt = jnp.dtype(compute_dtype) if compute_dtype is not None else jnp.dtype(x.dtype)

    # batch blocking so the MXU M-dimension is Bblk*T (~256)
    if block_batch is None:
        bblk = _pick_block_batch(B, T)
    else:
        bblk = int(block_batch)
        assert B % bblk == 0
    nb = B // bblk

    # channel-last (+ pre-padded T) so conv taps are plain shifted slices in-kernel.
    # (If the surrounding model keeps activations channel-last, these transposes
    #  can be dropped / fused by the caller.)
    x_t = jnp.transpose(x, (0, 2, 1)).astype(cdt)                   # (B, T, Cin)
    x_pad = jnp.pad(x_t, ((0, 0), (pad, pad), (0, 0)))              # (B, T+2p, Cin)

    # cond encoder (Mish -> Linear) hoisted out of the kernel: one well-shaped GEMM.
    ce = (_mish_stable(cond.astype(jnp.float32))
          @ params["cond_w"].astype(jnp.float32)
          + params["cond_b"].astype(jnp.float32))                   # (B, cond_ch)
    if use_film:
        scale = ce[:, :Cout].reshape(B, 1, Cout)
        bias = ce[:, Cout:].reshape(B, 1, Cout)
    else:
        bias = ce.reshape(B, 1, Cout)

    # factored group-indicator (C,G)/(G,C) instead of a resident (C,C) matrix
    gidx = jnp.arange(Cout) // gs
    A = (gidx[:, None] == jnp.arange(n_groups)[None, :]).astype(jnp.float32)
    AT = A.T

    row = lambda v: v.reshape(1, -1)
    w1c = w1.astype(cdt)
    b1 = row(params["conv1_b"])
    gn1g, gn1b = row(params["gn1_gamma"]), row(params["gn1_beta"])
    w2c = params["conv2_w"].astype(cdt)
    b2 = row(params["conv2_b"])
    gn2g, gn2b = row(params["gn2_gamma"]), row(params["gn2_beta"])

    # operand list / specs built conditionally (no dummy operands)
    operands = [x_pad]
    in_specs = [pl.BlockSpec((bblk, T + 2 * pad, Cin), lambda i: (i, 0, 0))]
    if use_film:
        operands.append(scale)
        in_specs.append(pl.BlockSpec((bblk, 1, Cout), lambda i: (i, 0, 0)))
    operands.append(bias)
    in_specs.append(pl.BlockSpec((bblk, 1, Cout), lambda i: (i, 0, 0)))

    def const3(shape):
        return pl.BlockSpec(shape, lambda i: (0, 0, 0))

    def const2(shape):
        return pl.BlockSpec(shape, lambda i: (0, 0))

    operands += [w1c, b1, gn1g, gn1b, w2c, b2, gn2g, gn2b, A, AT]
    in_specs += [
        const3((K, Cin, Cout)), const2((1, Cout)), const2((1, Cout)), const2((1, Cout)),
        const3((K, Cout, Cout)), const2((1, Cout)), const2((1, Cout)), const2((1, Cout)),
        const2((Cout, n_groups)), const2((n_groups, Cout)),
    ]
    if has_res:
        operands += [params["res_w"].astype(cdt), row(params["res_b"])]
        in_specs += [const2((Cin, Cout)), const2((1, Cout))]

    kernel = functools.partial(
        _residual_block_kernel, T=T, pad=pad, use_film=use_film,
        has_res=has_res, inv_n=1.0 / float(T * gs), eps=eps)

    # advisory cost estimate for XLA scheduling around the fused call
    flops = (2 * B * T * K * Cin * Cout + 2 * B * T * K * Cout * Cout
             + (2 * B * T * Cin * Cout if has_res else 0)
             + 4 * B * Cout * n_groups + 24 * B * T * Cout)
    transcendentals = 2 * B * T * Cout + 4 * B * Cout
    bytes_accessed = (sum(int(a.size) * a.dtype.itemsize for a in operands)
                      + B * T * Cout * jnp.dtype(x.dtype).itemsize)

    out = pl.pallas_call(
        kernel,
        out_shape=jax.ShapeDtypeStruct((B, T, Cout), x.dtype),
        grid_spec=pltpu.PrefetchScalarGridSpec(
            num_scalar_prefetch=0,
            grid=(nb,),
            in_specs=in_specs,
            out_specs=pl.BlockSpec((bblk, T, Cout), lambda i: (i, 0, 0)),
            scratch_shapes=[pltpu.VMEM((bblk, T + 2 * pad, Cout), cdt)],
        ),
        compiler_params=pltpu.CompilerParams(
            dimension_semantics=("parallel",),          # batch blocks shard across TCs
            vmem_limit_bytes=_vmem_limit_bytes(),
        ),
        cost_estimate=pl.CostEstimate(
            flops=int(flops), transcendentals=int(transcendentals),
            bytes_accessed=int(bytes_accessed)),
    )(*operands)

    return jnp.transpose(out, (0, 2, 1))                # (B, Cout, T)


# ----------------------------- params / reference ------------------------------

def init_params(key, in_channels, out_channels, cond_dim, kernel_size=3,
                n_groups=8, use_film_scale_modulation=False, dtype=jnp.float32):
    assert out_channels % n_groups == 0
    cond_channels = 2 * out_channels if use_film_scale_modulation else out_channels
    ks = jax.random.split(key, 12)

    def uniform(k, shape, fan_in):
        bound = 1.0 / math.sqrt(fan_in)
        return jax.random.uniform(k, shape, dtype, -bound, bound)

    params = {
        "conv1_w": uniform(ks[0], (kernel_size, in_channels, out_channels),
                           in_channels * kernel_size),
        "conv1_b": uniform(ks[1], (out_channels,), in_channels * kernel_size),
        "gn1_gamma": jnp.ones((out_channels,), dtype)
                     + 0.05 * jax.random.normal(ks[2], (out_channels,), dtype),
        "gn1_beta": 0.05 * jax.random.normal(ks[3], (out_channels,), dtype),
        "cond_w": uniform(ks[4], (cond_dim, cond_channels), cond_dim),
        "cond_b": uniform(ks[5], (cond_channels,), cond_dim),
        "conv2_w": uniform(ks[6], (kernel_size, out_channels, out_channels),
                           out_channels * kernel_size),
        "conv2_b": uniform(ks[7], (out_channels,), out_channels * kernel_size),
        "gn2_gamma": jnp.ones((out_channels,), dtype)
                     + 0.05 * jax.random.normal(ks[8], (out_channels,), dtype),
        "gn2_beta": 0.05 * jax.random.normal(ks[9], (out_channels,), dtype),
    }
    if in_channels != out_channels:
        params["res_w"] = uniform(ks[10], (in_channels, out_channels), in_channels)
        params["res_b"] = uniform(ks[11], (out_channels,), in_channels)
    return params


def reference(x, cond, params, *, n_groups=8, use_film_scale_modulation=False, eps=1e-5):
    """Pure-JAX reference mirroring the PyTorch module."""
    B, Cin, T = x.shape
    w1 = params["conv1_w"]
    Cout = w1.shape[2]
    xt = jnp.transpose(x, (0, 2, 1)).astype(jnp.float32)          # (B, T, Cin)

    def conv(h, w, b):
        p = w.shape[0] // 2
        hp = jnp.pad(h, ((0, 0), (p, p), (0, 0)))
        out = sum(jnp.einsum('btc,cd->btd', hp[:, k:k + h.shape[1], :],
                             w[k].astype(jnp.float32))
                  for k in range(w.shape[0]))
        return out + b.astype(jnp.float32)

    def group_norm(h, gamma, beta):
        Bh, Th, Ch = h.shape
        g = h.reshape(Bh, Th, n_groups, Ch // n_groups)
        m = jnp.mean(g, axis=(1, 3), keepdims=True)
        v = jnp.mean((g - m) ** 2, axis=(1, 3), keepdims=True)
        g = (g - m) * lax.rsqrt(v + eps)
        return (g.reshape(Bh, Th, Ch) * gamma.astype(jnp.float32)
                + beta.astype(jnp.float32))

    h = _mish_stable(group_norm(conv(xt, w1, params["conv1_b"]),
                                params["gn1_gamma"], params["gn1_beta"]))
    ce = (_mish_stable(cond.astype(jnp.float32)) @ params["cond_w"].astype(jnp.float32)
          + params["cond_b"].astype(jnp.float32))
    if use_film_scale_modulation:
        h = ce[:, None, :Cout] * h + ce[:, None, Cout:]
    else:
        h = h + ce[:, None, :]
    h = _mish_stable(group_norm(conv(h, params["conv2_w"], params["conv2_b"]),
                                params["gn2_gamma"], params["gn2_beta"]))
    if "res_w" in params:
        res = (jnp.einsum('btc,cd->btd', xt, params["res_w"].astype(jnp.float32))
               + params["res_b"].astype(jnp.float32))
    else:
        res = xt
    return jnp.transpose(h + res, (0, 2, 1)).astype(x.dtype)


# ----------------------------------- main ---------------------------------------

if __name__ == "__main__":
    key = jax.random.PRNGKey(0)
    configs = [
        # (has_res path, no FiLM scale) -- also exercises Bblk=2 batch blocking
        dict(B=4, Cin=8, Cout=16, T=16, cond_dim=4, n_groups=8, use_film=False),
        # (identity residual, FiLM scale+bias)
        dict(B=4, Cin=16, Cout=16, T=16, cond_dim=4, n_groups=8, use_film=True),
    ]
    for idx, cfg in enumerate(configs):
        kx, kc, kp = jax.random.split(jax.random.fold_in(key, idx), 3)
        x = jax.random.normal(kx, (cfg["B"], cfg["Cin"], cfg["T"]), jnp.float32)
        cond = jax.random.normal(kc, (cfg["B"], cfg["cond_dim"]), jnp.float32)
        params = init_params(kp, cfg["Cin"], cfg["Cout"], cfg["cond_dim"],
                             kernel_size=3, n_groups=cfg["n_groups"],
                             use_film_scale_modulation=cfg["use_film"])
        y = diffusion_conditional_residual_block_1d(
            x, cond, params, n_groups=cfg["n_groups"],
            use_film_scale_modulation=cfg["use_film"])
        y = jax.block_until_ready(y)
        y_ref = reference(x, cond, params, n_groups=cfg["n_groups"],
                          use_film_scale_modulation=cfg["use_film"])
        assert y.shape == (cfg["B"], cfg["Cout"], cfg["T"])
        assert jnp.allclose(y, y_ref, atol=2e-4, rtol=2e-4), (
            f"mismatch vs reference (config {idx}): "
            f"max abs err {jnp.max(jnp.abs(y - y_ref))}")
    print("KERNEL_OK")
</pallas_src>

<mosaic_0001>
module attributes {stable_mosaic.version = 11 : i64} {
  func.func @_residual_block_kernel(%arg0: i32, %arg1: memref<2x18x8xf32, #tpu.memory_space<vmem>>, %arg2: memref<2x1x16xf32, #tpu.memory_space<vmem>>, %arg3: memref<3x8x16xf32, #tpu.memory_space<vmem>>, %arg4: memref<1x16xf32, #tpu.memory_space<vmem>>, %arg5: memref<1x16xf32, #tpu.memory_space<vmem>>, %arg6: memref<1x16xf32, #tpu.memory_space<vmem>>, %arg7: memref<3x16x16xf32, #tpu.memory_space<vmem>>, %arg8: memref<1x16xf32, #tpu.memory_space<vmem>>, %arg9: memref<1x16xf32, #tpu.memory_space<vmem>>, %arg10: memref<1x16xf32, #tpu.memory_space<vmem>>, %arg11: memref<16x8xf32, #tpu.memory_space<vmem>>, %arg12: memref<8x16xf32, #tpu.memory_space<vmem>>, %arg13: memref<8x16xf32, #tpu.memory_space<vmem>>, %arg14: memref<1x16xf32, #tpu.memory_space<vmem>>, %arg15: memref<2x16x16xf32, #tpu.memory_space<vmem>>, %arg16: memref<2x18x16xf32, #tpu.memory_space<vmem>>) attributes {dimension_semantics = [#tpu.dimension_semantics<parallel>], iteration_bounds = array<i64: 2>, scalar_prefetch = 0 : i64, scratch_operands = 1 : i64, tpu.core_type = #tpu.core_type<tc>, window_params = [{transform_indices = @transform_0, window_bounds = array<i64: 2, 18, 8>}, {transform_indices = @transform_1, window_bounds = array<i64: 2, 1, 16>}, {pipeline_mode = #tpu.pipeline_mode<synchronous>, transform_indices = @transform_2, window_bounds = array<i64: 3, 8, 16>}, {pipeline_mode = #tpu.pipeline_mode<synchronous>, transform_indices = @transform_3, window_bounds = array<i64: 1, 16>}, {pipeline_mode = #tpu.pipeline_mode<synchronous>, transform_indices = @transform_4, window_bounds = array<i64: 1, 16>}, {pipeline_mode = #tpu.pipeline_mode<synchronous>, transform_indices = @transform_5, window_bounds = array<i64: 1, 16>}, {pipeline_mode = #tpu.pipeline_mode<synchronous>, transform_indices = @transform_6, window_bounds = array<i64: 3, 16, 16>}, {pipeline_mode = #tpu.pipeline_mode<synchronous>, transform_indices = @transform_7, window_bounds = array<i64: 1, 16>}, {pipeline_mode = #tpu.pipeline_mode<synchronous>, transform_indices = @transform_8, window_bounds = array<i64: 1, 16>}, {pipeline_mode = #tpu.pipeline_mode<synchronous>, transform_indices = @transform_9, window_bounds = array<i64: 1, 16>}, {pipeline_mode = #tpu.pipeline_mode<synchronous>, transform_indices = @transform_10, window_bounds = array<i64: 16, 8>}, {pipeline_mode = #tpu.pipeline_mode<synchronous>, transform_indices = @transform_11, window_bounds = array<i64: 8, 16>}, {pipeline_mode = #tpu.pipeline_mode<synchronous>, transform_indices = @transform_12, window_bounds = array<i64: 8, 16>}, {pipeline_mode = #tpu.pipeline_mode<synchronous>, transform_indices = @transform_13, window_bounds = array<i64: 1, 16>}, {transform_indices = @transform_14, window_bounds = array<i64: 2, 16, 16>}]} {
    %c0 = arith.constant 0 : index
    %c0_0 = arith.constant 0 : index
    %c0_1 = arith.constant 0 : index
    %0 = vector.load %arg1[%c0, %c0_0, %c0_1] : memref<2x18x8xf32, #tpu.memory_space<vmem>>, vector<2x16x8xf32>
    %1 = vector.shape_cast %0 : vector<2x16x8xf32> to vector<32x8xf32>
    %c0_2 = arith.constant 0 : index
    %c0_3 = arith.constant 0 : index
    %c0_4 = arith.constant 0 : index
    %2 = vector.load %arg3[%c0_2, %c0_3, %c0_4] : memref<3x8x16xf32, #tpu.memory_space<vmem>>, vector<1x8x16xf32>
    %3 = vector.shape_cast %2 : vector<1x8x16xf32> to vector<8x16xf32>
    %cst = arith.constant dense<0.000000e+00> : vector<32x16xf32>
    %4 = tpu.matmul %1, %3, %cst {dimension_numbers = #tpu.dot_dimension_numbers<[1], [0], [0], [1], [0, 0, 1, 1], [], []>} : vector<32x8xf32>, vector<8x16xf32>, vector<32x16xf32> -> vector<32x16xf32>
    %c0_5 = arith.constant 0 : index
    %c1 = arith.constant 1 : index
    %c0_6 = arith.constant 0 : index
    %5 = vector.load %arg1[%c0_5, %c1, %c0_6] : memref<2x18x8xf32, #tpu.memory_space<vmem>>, vector<2x16x8xf32>
    %6 = vector.shape_cast %5 : vector<2x16x8xf32> to vector<32x8xf32>
    %c1_7 = arith.constant 1 : index
    %c0_8 = arith.constant 0 : index
    %c0_9 = arith.constant 0 : index
    %7 = vector.load %arg3[%c1_7, %c0_8, %c0_9] : memref<3x8x16xf32, #tpu.memory_space<vmem>>, vector<1x8x16xf32>
    %8 = vector.shape_cast %7 : vector<1x8x16xf32> to vector<8x16xf32>
    %cst_10 = arith.constant dense<0.000000e+00> : vector<32x16xf32>
    %9 = tpu.matmul %6, %8, %cst_10 {dimension_numbers = #tpu.dot_dimension_numbers<[1], [0], [0], [1], [0, 0, 1, 1], [], []>} : vector<32x8xf32>, vector<8x16xf32>, vector<32x16xf32> -> vector<32x16xf32>
    %10 = arith.addf %4, %9 : vector<32x16xf32>
    %c0_11 = arith.constant 0 : index
    %c2 = arith.constant 2 : index
    %c0_12 = arith.constant 0 : index
    %11 = vector.load %arg1[%c0_11, %c2, %c0_12] : memref<2x18x8xf32, #tpu.memory_space<vmem>>, vector<2x16x8xf32>
    %12 = vector.shape_cast %11 : vector<2x16x8xf32> to vector<32x8xf32>
    %c2_13 = arith.constant 2 : index
    %c0_14 = arith.constant 0 : index
    %c0_15 = arith.constant 0 : index
    %13 = vector.load %arg3[%c2_13, %c0_14, %c0_15] : memref<3x8x16xf32, #tpu.memory_space<vmem>>, vector<1x8x16xf32>
    %14 = vector.shape_cast %13 : vector<1x8x16xf32> to vector<8x16xf32>
    %cst_16 = arith.constant dense<0.000000e+00> : vector<32x16xf32>
    %15 = tpu.matmul %12, %14, %cst_16 {dimension_numbers = #tpu.dot_dimension_numbers<[1], [0], [0], [1], [0, 0, 1, 1], [], []>} : vector<32x8xf32>, vector<8x16xf32>, vector<32x16xf32> -> vector<32x16xf32>
    %16 = arith.addf %10, %15 : vector<32x16xf32>
    %c0_17 = arith.constant 0 : index
    %c0_18 = arith.constant 0 : index
    %17 = vector.load %arg4[%c0_17, %c0_18] : memref<1x16xf32, #tpu.memory_space<vmem>>, vector<1x16xf32>
    %18 = vector.broadcast %17 : vector<1x16xf32> to vector<32x16xf32>
    %19 = arith.addf %16, %18 : vector<32x16xf32>
    %20 = vector.shape_cast %19 : vector<32x16xf32> to vector<2x16x16xf32>
    %cst_19 = arith.constant dense<0.000000e+00> : vector<2x16xf32>
    %21 = vector.multi_reduction <add>, %20, %cst_19 [1] : vector<2x16x16xf32> to vector<2x16xf32>
    %22 = arith.mulf %20, %20 : vector<2x16x16xf32>
    %cst_20 = arith.constant dense<0.000000e+00> : vector<2x16xf32>
    %23 = vector.multi_reduction <add>, %22, %cst_20 [1] : vector<2x16x16xf32> to vector<2x16xf32>
    %24 = tpu.concatenate %21, %23 in 0 : vector<2x16xf32>, vector<2x16xf32> -> vector<4x16xf32>
    %c0_21 = arith.constant 0 : index
    %c0_22 = arith.constant 0 : index
    %25 = vector.load %arg11[%c0_21, %c0_22] : memref<16x8xf32, #tpu.memory_space<vmem>>, vector<16x8xf32>
    %cst_23 = arith.constant dense<0.000000e+00> : vector<4x8xf32>
    %26 = tpu.matmul %24, %25, %cst_23 {dimension_numbers = #tpu.dot_dimension_numbers<[1], [0], [0], [1], [0, 0, 1, 1], [], []>} : vector<4x16xf32>, vector<16x8xf32>, vector<4x8xf32> -> vector<4x8xf32>
    %c0_24 = arith.constant 0 : index
    %c0_25 = arith.constant 0 : index
    %27 = vector.load %arg12[%c0_24, %c0_25] : memref<8x16xf32, #tpu.memory_space<vmem>>, vector<8x16xf32>
    %cst_26 = arith.constant dense<0.000000e+00> : vector<4x16xf32>
    %28 = tpu.matmul %26, %27, %cst_26 {dimension_numbers = #tpu.dot_dimension_numbers<[1], [0], [0], [1], [0, 0, 1, 1], [], []>} : vector<4x8xf32>, vector<8x16xf32>, vector<4x16xf32> -> vector<4x16xf32>
    %29 = vector.extract_strided_slice %28 {offsets = [0, 0], sizes = [2, 16], strides = [1, 1]} : vector<4x16xf32> to vector<2x16xf32>
    %cst_27 = arith.constant 3.125000e-02 : f32
    %30 = vector.broadcast %cst_27 : f32 to vector<2x16xf32>
    %31 = arith.mulf %29, %30 : vector<2x16xf32>
    %32 = vector.extract_strided_slice %28 {offsets = [2, 0], sizes = [2, 16], strides = [1, 1]} : vector<4x16xf32> to vector<2x16xf32>
    %cst_28 = arith.constant 3.125000e-02 : f32
    %33 = vector.broadcast %cst_28 : f32 to vector<2x16xf32>
    %34 = arith.mulf %32, %33 : vector<2x16xf32>
    %35 = arith.mulf %31, %31 : vector<2x16xf32>
    %36 = arith.subf %34, %35 : vector<2x16xf32>
    %cst_29 = arith.constant 9.99999974E-6 : f32
    %37 = vector.broadcast %cst_29 : f32 to vector<2x16xf32>
    %38 = arith.addf %36, %37 : vector<2x16xf32>
    %39 = math.rsqrt %38 : vector<2x16xf32>
    %c0_30 = arith.constant 0 : index
    %c0_31 = arith.constant 0 : index
    %40 = vector.load %arg5[%c0_30, %c0_31] : memref<1x16xf32, #tpu.memory_space<vmem>>, vector<1x16xf32>
    %c0_32 = arith.constant 0 : index
    %c0_33 = arith.constant 0 : index
    %41 = vector.load %arg6[%c0_32, %c0_33] : memref<1x16xf32, #tpu.memory_space<vmem>>, vector<1x16xf32>
    %42 = vector.shape_cast %31 : vector<2x16xf32> to vector<2x1x16xf32>
    %43 = vector.broadcast %42 : vector<2x1x16xf32> to vector<2x16x16xf32>
    %44 = arith.subf %20, %43 : vector<2x16x16xf32>
    %45 = vector.shape_cast %39 : vector<2x16xf32> to vector<2x1x16xf32>
    %46 = vector.broadcast %45 : vector<2x1x16xf32> to vector<2x16x16xf32>
    %47 = arith.mulf %44, %46 : vector<2x16x16xf32>
    %48 = vector.shape_cast %40 : vector<1x16xf32> to vector<1x1x16xf32>
    %49 = vector.broadcast %48 : vector<1x1x16xf32> to vector<2x16x16xf32>
    %50 = arith.mulf %47, %49 : vector<2x16x16xf32>
    %51 = vector.shape_cast %41 : vector<1x16xf32> to vector<1x1x16xf32>
    %52 = vector.broadcast %51 : vector<1x1x16xf32> to vector<2x16x16xf32>
    %53 = arith.addf %50, %52 : vector<2x16x16xf32>
    %54 = math.exp %53 : vector<2x16x16xf32>
    %cst_34 = arith.constant 2.000000e+00 : f32
    %55 = vector.broadcast %cst_34 : f32 to vector<2x16x16xf32>
    %56 = arith.addf %54, %55 : vector<2x16x16xf32>
    %57 = arith.mulf %54, %56 : vector<2x16x16xf32>
    %cst_35 = arith.constant 2.000000e+00 : f32
    %58 = vector.broadcast %cst_35 : f32 to vector<2x16x16xf32>
    %59 = arith.addf %57, %58 : vector<2x16x16xf32>
    %60 = arith.divf %57, %59 : vector<2x16x16xf32>
    %61 = arith.mulf %53, %60 : vector<2x16x16xf32>
    %cst_36 = arith.constant 2.000000e+01 : f32
    %62 = vector.broadcast %cst_36 : f32 to vector<2x16x16xf32>
    %63 = arith.cmpf ogt, %53, %62 : vector<2x16x16xf32>
    %64 = arith.select %63, %53, %61 : vector<2x16x16xi1>, vector<2x16x16xf32>
    %c0_37 = arith.constant 0 : index
    %c0_38 = arith.constant 0 : index
    %c0_39 = arith.constant 0 : index
    %65 = vector.load %arg2[%c0_37, %c0_38, %c0_39] : memref<2x1x16xf32, #tpu.memory_space<vmem>>, vector<2x1x16xf32>
    %66 = vector.broadcast %65 : vector<2x1x16xf32> to vector<2x16x16xf32>
    %67 = arith.addf %64, %66 : vector<2x16x16xf32>
    %cst_40 = arith.constant 0.000000e+00 : f32
    %68 = vector.broadcast %cst_40 : f32 to vector<2x1x16xf32>
    %c0_41 = arith.constant 0 : index
    %c0_42 = arith.constant 0 : index
    %c0_43 = arith.constant 0 : index
    %69 = vector.load %arg16[%c0_41, %c0_42, %c0_43] : memref<2x18x16xf32, #tpu.memory_space<vmem>>, vector<2x1x16xf32>
    tpu.vector_store %arg16[%c0_41, %c0_42, %c0_43], %68 {strides = array<i32>} : memref<2x18x16xf32, #tpu.memory_space<vmem>>, vector<2x1x16xf32>,
    %cst_44 = arith.constant 0.000000e+00 : f32
    %70 = vector.broadcast %cst_44 : f32 to vector<2x1x16xf32>
    %c0_45 = arith.constant 0 : index
    %c17 = arith.constant 17 : index
    %c0_46 = arith.constant 0 : index
    %71 = vector.load %arg16[%c0_45, %c17, %c0_46] : memref<2x18x16xf32, #tpu.memory_space<vmem>>, vector<2x1x16xf32>
    tpu.vector_store %arg16[%c0_45, %c17, %c0_46], %70 {strides = array<i32>} : memref<2x18x16xf32, #tpu.memory_space<vmem>>, vector<2x1x16xf32>,
    %c0_47 = arith.constant 0 : index
    %c1_48 = arith.constant 1 : index
    %c0_49 = arith.constant 0 : index
    %72 = vector.load %arg16[%c0_47, %c1_48, %c0_49] : memref<2x18x16xf32, #tpu.memory_space<vmem>>, vector<2x16x16xf32>
    tpu.vector_store %arg16[%c0_47, %c1_48, %c0_49], %67 {strides = array<i32>} : memref<2x18x16xf32, #tpu.memory_space<vmem>>, vector<2x16x16xf32>,
    %c0_50 = arith.constant 0 : index
    %c0_51 = arith.constant 0 : index
    %c0_52 = arith.constant 0 : index
    %73 = vector.load %arg16[%c0_50, %c0_51, %c0_52] : memref<2x18x16xf32, #tpu.memory_space<vmem>>, vector<2x16x16xf32>
    %74 = vector.shape_cast %73 : vector<2x16x16xf32> to vector<32x16xf32>
    %c0_53 = arith.constant 0 : index
    %c0_54 = arith.constant 0 : index
    %c0_55 = arith.constant 0 : index
    %75 = vector.load %arg7[%c0_53, %c0_54, %c0_55] : memref<3x16x16xf32, #tpu.memory_space<vmem>>, vector<1x16x16xf32>
    %76 = vector.shape_cast %75 : vector<1x16x16xf32> to vector<16x16xf32>
    %cst_56 = arith.constant dense<0.000000e+00> : vector<32x16xf32>
    %77 = tpu.matmul %74, %76, %cst_56 {dimension_numbers = #tpu.dot_dimension_numbers<[1], [0], [0], [1], [0, 0, 1, 1], [], []>} : vector<32x16xf32>, vector<16x16xf32>, vector<32x16xf32> -> vector<32x16xf32>
    %c0_57 = arith.constant 0 : index
    %c1_58 = arith.constant 1 : index
    %c0_59 = arith.constant 0 : index
    %78 = vector.load %arg16[%c0_57, %c1_58, %c0_59] : memref<2x18x16xf32, #tpu.memory_space<vmem>>, vector<2x16x16xf32>
    %79 = vector.shape_cast %78 : vector<2x16x16xf32> to vector<32x16xf32>
    %c1_60 = arith.constant 1 : index
    %c0_61 = arith.constant 0 : index
    %c0_62 = arith.constant 0 : index
    %80 = vector.load %arg7[%c1_60, %c0_61, %c0_62] : memref<3x16x16xf32, #tpu.memory_space<vmem>>, vector<1x16x16xf32>
    %81 = vector.shape_cast %80 : vector<1x16x16xf32> to vector<16x16xf32>
    %cst_63 = arith.constant dense<0.000000e+00> : vector<32x16xf32>
    %82 = tpu.matmul %79, %81, %cst_63 {dimension_numbers = #tpu.dot_dimension_numbers<[1], [0], [0], [1], [0, 0, 1, 1], [], []>} : vector<32x16xf32>, vector<16x16xf32>, vector<32x16xf32> -> vector<32x16xf32>
    %83 = arith.addf %77, %82 : vector<32x16xf32>
    %c0_64 = arith.constant 0 : index
    %c2_65 = arith.constant 2 : index
    %c0_66 = arith.constant 0 : index
    %84 = vector.load %arg16[%c0_64, %c2_65, %c0_66] : memref<2x18x16xf32, #tpu.memory_space<vmem>>, vector<2x16x16xf32>
    %85 = vector.shape_cast %84 : vector<2x16x16xf32> to vector<32x16xf32>
    %c2_67 = arith.constant 2 : index
    %c0_68 = arith.constant 0 : index
    %c0_69 = arith.constant 0 : index
    %86 = vector.load %arg7[%c2_67, %c0_68, %c0_69] : memref<3x16x16xf32, #tpu.memory_space<vmem>>, vector<1x16x16xf32>
    %87 = vector.shape_cast %86 : vector<1x16x16xf32> to vector<16x16xf32>
    %cst_70 = arith.constant dense<0.000000e+00> : vector<32x16xf32>
    %88 = tpu.matmul %85, %87, %cst_70 {dimension_numbers = #tpu.dot_dimension_numbers<[1], [0], [0], [1], [0, 0, 1, 1], [], []>} : vector<32x16xf32>, vector<16x16xf32>, vector<32x16xf32> -> vector<32x16xf32>
    %89 = arith.addf %83, %88 : vector<32x16xf32>
    %c0_71 = arith.constant 0 : index
    %c0_72 = arith.constant 0 : index
    %90 = vector.load %arg8[%c0_71, %c0_72] : memref<1x16xf32, #tpu.memory_space<vmem>>, vector<1x16xf32>
    %91 = vector.broadcast %90 : vector<1x16xf32> to vector<32x16xf32>
    %92 = arith.addf %89, %91 : vector<32x16xf32>
    %93 = vector.shape_cast %92 : vector<32x16xf32> to vector<2x16x16xf32>
    %cst_73 = arith.constant dense<0.000000e+00> : vector<2x16xf32>
    %94 = vector.multi_reduction <add>, %93, %cst_73 [1] : vector<2x16x16xf32> to vector<2x16xf32>
    %95 = arith.mulf %93, %93 : vector<2x16x16xf32>
    %cst_74 = arith.constant dense<0.000000e+00> : vector<2x16xf32>
    %96 = vector.multi_reduction <add>, %95, %cst_74 [1] : vector<2x16x16xf32> to vector<2x16xf32>
    %97 = tpu.concatenate %94, %96 in 0 : vector<2x16xf32>, vector<2x16xf32> -> vector<4x16xf32>
    %c0_75 = arith.constant 0 : index
    %c0_76 = arith.constant 0 : index
    %98 = vector.load %arg11[%c0_75, %c0_76] : memref<16x8xf32, #tpu.memory_space<vmem>>, vector<16x8xf32>
    %cst_77 = arith.constant dense<0.000000e+00> : vector<4x8xf32>
    %99 = tpu.matmul %97, %98, %cst_77 {dimension_numbers = #tpu.dot_dimension_numbers<[1], [0], [0], [1], [0, 0, 1, 1], [], []>} : vector<4x16xf32>, vector<16x8xf32>, vector<4x8xf32> -> vector<4x8xf32>
    %c0_78 = arith.constant 0 : index
    %c0_79 = arith.constant 0 : index
    %100 = vector.load %arg12[%c0_78, %c0_79] : memref<8x16xf32, #tpu.memory_space<vmem>>, vector<8x16xf32>
    %cst_80 = arith.constant dense<0.000000e+00> : vector<4x16xf32>
    %101 = tpu.matmul %99, %100, %cst_80 {dimension_numbers = #tpu.dot_dimension_numbers<[1], [0], [0], [1], [0, 0, 1, 1], [], []>} : vector<4x8xf32>, vector<8x16xf32>, vector<4x16xf32> -> vector<4x16xf32>
    %102 = vector.extract_strided_slice %101 {offsets = [0, 0], sizes = [2, 16], strides = [1, 1]} : vector<4x16xf32> to vector<2x16xf32>
    %cst_81 = arith.constant 3.125000e-02 : f32
    %103 = vector.broadcast %cst_81 : f32 to vector<2x16xf32>
    %104 = arith.mulf %102, %103 : vector<2x16xf32>
    %105 = vector.extract_strided_slice %101 {offsets = [2, 0], sizes = [2, 16], strides = [1, 1]} : vector<4x16xf32> to vector<2x16xf32>
    %cst_82 = arith.constant 3.125000e-02 : f32
    %106 = vector.broadcast %cst_82 : f32 to vector<2x16xf32>
    %107 = arith.mulf %105, %106 : vector<2x16xf32>
    %108 = arith.mulf %104, %104 : vector<2x16xf32>
    %109 = arith.subf %107, %108 : vector<2x16xf32>
    %cst_83 = arith.constant 9.99999974E-6 : f32
    %110 = vector.broadcast %cst_83 : f32 to vector<2x16xf32>
    %111 = arith.addf %109, %110 : vector<2x16xf32>
    %112 = math.rsqrt %111 : vector<2x16xf32>
    %c0_84 = arith.constant 0 : index
    %c0_85 = arith.constant 0 : index
    %113 = vector.load %arg9[%c0_84, %c0_85] : memref<1x16xf32, #tpu.memory_space<vmem>>, vector<1x16xf32>
    %c0_86 = arith.constant 0 : index
    %c0_87 = arith.constant 0 : index
    %114 = vector.load %arg10[%c0_86, %c0_87] : memref<1x16xf32, #tpu.memory_space<vmem>>, vector<1x16xf32>
    %115 = vector.shape_cast %104 : vector<2x16xf32> to vector<2x1x16xf32>
    %116 = vector.broadcast %115 : vector<2x1x16xf32> to vector<2x16x16xf32>
    %117 = arith.subf %93, %116 : vector<2x16x16xf32>
    %118 = vector.shape_cast %112 : vector<2x16xf32> to vector<2x1x16xf32>
    %119 = vector.broadcast %118 : vector<2x1x16xf32> to vector<2x16x16xf32>
    %120 = arith.mulf %117, %119 : vector<2x16x16xf32>
    %121 = vector.shape_cast %113 : vector<1x16xf32> to vector<1x1x16xf32>
    %122 = vector.broadcast %121 : vector<1x1x16xf32> to vector<2x16x16xf32>
    %123 = arith.mulf %120, %122 : vector<2x16x16xf32>
    %124 = vector.shape_cast %114 : vector<1x16xf32> to vector<1x1x16xf32>
    %125 = vector.broadcast %124 : vector<1x1x16xf32> to vector<2x16x16xf32>
    %126 = arith.addf %123, %125 : vector<2x16x16xf32>
    %127 = math.exp %126 : vector<2x16x16xf32>
    %cst_88 = arith.constant 2.000000e+00 : f32
    %128 = vector.broadcast %cst_88 : f32 to vector<2x16x16xf32>
    %129 = arith.addf %127, %128 : vector<2x16x16xf32>
    %130 = arith.mulf %127, %129 : vector<2x16x16xf32>
    %cst_89 = arith.constant 2.000000e+00 : f32
    %131 = vector.broadcast %cst_89 : f32 to vector<2x16x16xf32>
    %132 = arith.addf %130, %131 : vector<2x16x16xf32>
    %133 = arith.divf %130, %132 : vector<2x16x16xf32>
    %134 = arith.mulf %126, %133 : vector<2x16x16xf32>
    %cst_90 = arith.constant 2.000000e+01 : f32
    %135 = vector.broadcast %cst_90 : f32 to vector<2x16x16xf32>
    %136 = arith.cmpf ogt, %126, %135 : vector<2x16x16xf32>
    %137 = arith.select %136, %126, %134 : vector<2x16x16xi1>, vector<2x16x16xf32>
    %c0_91 = arith.constant 0 : index
    %c1_92 = arith.constant 1 : index
    %c0_93 = arith.constant 0 : index
    %138 = vector.load %arg1[%c0_91, %c1_92, %c0_93] : memref<2x18x8xf32, #tpu.memory_space<vmem>>, vector<2x16x8xf32>
    %139 = vector.shape_cast %138 : vector<2x16x8xf32> to vector<32x8xf32>
    %c0_94 = arith.constant 0 : index
    %c0_95 = arith.constant 0 : index
    %140 = vector.load %arg13[%c0_94, %c0_95] : memref<8x16xf32, #tpu.memory_space<vmem>>, vector<8x16xf32>
    %cst_96 = arith.constant dense<0.000000e+00> : vector<32x16xf32>
    %141 = tpu.matmul %139, %140, %cst_96 {dimension_numbers = #tpu.dot_dimension_numbers<[1], [0], [0], [1], [0, 0, 1, 1], [], []>} : vector<32x8xf32>, vector<8x16xf32>, vector<32x16xf32> -> vector<32x16xf32>
    %c0_97 = arith.constant 0 : index
    %c0_98 = arith.constant 0 : index
    %142 = vector.load %arg14[%c0_97, %c0_98] : memref<1x16xf32, #tpu.memory_space<vmem>>, vector<1x16xf32>
    %143 = vector.broadcast %142 : vector<1x16xf32> to vector<32x16xf32>
    %144 = arith.addf %141, %143 : vector<32x16xf32>
    %145 = vector.shape_cast %144 : vector<32x16xf32> to vector<2x16x16xf32>
    %146 = arith.addf %137, %145 : vector<2x16x16xf32>
    %c0_99 = arith.constant 0 : index
    %c0_100 = arith.constant 0 : index
    %c0_101 = arith.constant 0 : index
    %147 = vector.load %arg15[%c0_99, %c0_100, %c0_101] : memref<2x16x16xf32, #tpu.memory_space<vmem>>, vector<2x16x16xf32>
    tpu.vector_store %arg15[%c0_99, %c0_100, %c0_101], %146 {strides = array<i32>} : memref<2x16x16xf32, #tpu.memory_space<vmem>>, vector<2x16x16xf32>,
    return
  }
  func.func @transform_0(%arg0: i32) -> (i32, i32, i32) {
    %c0_i32 = arith.constant 0 : i32
    %c0_i32_0 = arith.constant 0 : i32
    %c0_i32_1 = arith.constant 0 : i32
    return %arg0, %c0_i32, %c0_i32_0 : i32, i32, i32
  }
  func.func @transform_1(%arg0: i32) -> (i32, i32, i32) {
    %c0_i32 = arith.constant 0 : i32
    %c0_i32_0 = arith.constant 0 : i32
    %c0_i32_1 = arith.constant 0 : i32
    return %arg0, %c0_i32, %c0_i32_0 : i32, i32, i32
  }
  func.func @transform_2(%arg0: i32) -> (i32, i32, i32) {
    %c0_i32 = arith.constant 0 : i32
    %c0_i32_0 = arith.constant 0 : i32
    %c0_i32_1 = arith.constant 0 : i32
    %c0_i32_2 = arith.constant 0 : i32
    return %c0_i32, %c0_i32_0, %c0_i32_1 : i32, i32, i32
  }
  func.func @transform_3(%arg0: i32) -> (i32, i32) {
    %c0_i32 = arith.constant 0 : i32
    %c0_i32_0 = arith.constant 0 : i32
    %c0_i32_1 = arith.constant 0 : i32
    return %c0_i32, %c0_i32_0 : i32, i32
  }
  func.func @transform_4(%arg0: i32) -> (i32, i32) {
    %c0_i32 = arith.constant 0 : i32
    %c0_i32_0 = arith.constant 0 : i32
    %c0_i32_1 = arith.constant 0 : i32
    return %c0_i32, %c0_i32_0 : i32, i32
  }
  func.func @transform_5(%arg0: i32) -> (i32, i32) {
    %c0_i32 = arith.constant 0 : i32
    %c0_i32_0 = arith.constant 0 : i32
    %c0_i32_1 = arith.constant 0 : i32
    return %c0_i32, %c0_i32_0 : i32, i32
  }
  func.func @transform_6(%arg0: i32) -> (i32, i32, i32) {
    %c0_i32 = arith.constant 0 : i32
    %c0_i32_0 = arith.constant 0 : i32
    %c0_i32_1 = arith.constant 0 : i32
    %c0_i32_2 = arith.constant 0 : i32
    return %c0_i32, %c0_i32_0, %c0_i32_1 : i32, i32, i32
  }
  func.func @transform_7(%arg0: i32) -> (i32, i32) {
    %c0_i32 = arith.constant 0 : i32
    %c0_i32_0 = arith.constant 0 : i32
    %c0_i32_1 = arith.constant 0 : i32
    return %c0_i32, %c0_i32_0 : i32, i32
  }
  func.func @transform_8(%arg0: i32) -> (i32, i32) {
    %c0_i32 = arith.constant 0 : i32
    %c0_i32_0 = arith.constant 0 : i32
    %c0_i32_1 = arith.constant 0 : i32
    return %c0_i32, %c0_i32_0 : i32, i32
  }
  func.func @transform_9(%arg0: i32) -> (i32, i32) {
    %c0_i32 = arith.constant 0 : i32
    %c0_i32_0 = arith.constant 0 : i32
    %c0_i32_1 = arith.constant 0 : i32
    return %c0_i32, %c0_i32_0 : i32, i32
  }
  func.func @transform_10(%arg0: i32) -> (i32, i32) {
    %c0_i32 = arith.constant 0 : i32
    %c0_i32_0 = arith.constant 0 : i32
    %c0_i32_1 = arith.constant 0 : i32
    return %c0_i32, %c0_i32_0 : i32, i32
  }
  func.func @transform_11(%arg0: i32) -> (i32, i32) {
    %c0_i32 = arith.constant 0 : i32
    %c0_i32_0 = arith.constant 0 : i32
    %c0_i32_1 = arith.constant 0 : i32
    return %c0_i32, %c0_i32_0 : i32, i32
  }
  func.func @transform_12(%arg0: i32) -> (i32, i32) {
    %c0_i32 = arith.constant 0 : i32
    %c0_i32_0 = arith.constant 0 : i32
    %c0_i32_1 = arith.constant 0 : i32
    return %c0_i32, %c0_i32_0 : i32, i32
  }
  func.func @transform_13(%arg0: i32) -> (i32, i32) {
    %c0_i32 = arith.constant 0 : i32
    %c0_i32_0 = arith.constant 0 : i32
    %c0_i32_1 = arith.constant 0 : i32
    return %c0_i32, %c0_i32_0 : i32, i32
  }
  func.func @transform_14(%arg0: i32) -> (i32, i32, i32) {
    %c0_i32 = arith.constant 0 : i32
    %c0_i32_0 = arith.constant 0 : i32
    %c0_i32_1 = arith.constant 0 : i32
    return %arg0, %c0_i32, %c0_i32_0 : i32, i32, i32
  }
}

</mosaic_0001>

<bundles_post_ra>
// kernel: tpu_custom_call.1
= control target key start
LH: loop header
LB: loop body
LE: loop exit
PB: predicated region body
PF: predicated region fallthrough
CT: control target
= control target key end

     0   :  { %s2188_s0 = inlined_call_operand.vmem [shape: f32[4,18,8], index: 0, kind: input, shape index: {}]   ;;  %s2189_s1 = inlined_call_operand.vmem [shape: f32[4,1,16], index: 1, kind: input, shape index: {}]   ;;  %s2190_s2 = inlined_call_operand.vmem [shape: f32[3,8,16], index: 2, kind: input, shape index: {}]   ;;  %s2191_s3 = inlined_call_operand.vmem [shape: f32[1,16], index: 3, kind: input, shape index: {}]   ;;  %s2192_s4 = inlined_call_operand.vmem [shape: f32[1,16], index: 4, kind: input, shape index: {}]   ;;  %s2193_s5 = inlined_call_operand.vmem [shape: f32[1,16], index: 5, kind: input, shape index: {}]   ;;  %s2194_s6 = inlined_call_operand.vmem [shape: f32[3,16,16], index: 6, kind: input, shape index: {}]   ;;  %s2195_s7 = inlined_call_operand.vmem [shape: f32[1,16], index: 7, kind: input, shape index: {}]   ;;  %s2196_s8 = inlined_call_operand.vmem [shape: f32[1,16], index: 8, kind: input, shape index: {}]   ;;  %s2197_s9 = inlined_call_operand.vmem [shape: f32[1,16], index: 9, kind: input, shape index: {}]   ;;  %s2198_s10 = inlined_call_operand.vmem [shape: f32[16,8], index: 10, kind: input, shape index: {}]   ;;  %s2199_s11 = inlined_call_operand.vmem [shape: f32[8,16], index: 11, kind: input, shape index: {}]   ;;  %s2200_s12 = inlined_call_operand.vmem [shape: f32[8,16], index: 12, kind: input, shape index: {}]   ;;  %s2201_s13 = inlined_call_operand.vmem [shape: f32[1,16], index: 13, kind: input, shape index: {}]   ;;  %s2202_s14 = inlined_call_operand.hbm [shape: f32[4,16,16], index: 14, kind: output, shape index: {}]  }
   0x1   :  { %2204 = sst [smem:[#allocation7_spill]] %s2188_s0 }
   0x2   :  { %2205 = sst [smem:[#allocation8_spill]] %s2189_s1 }
   0x3   :  { %2206 = sst [smem:[#allocation9_spill]] %s2190_s2 }
   0x4   :  { %19 = vsyncpa [#allocation4], 0 }
   0x5   :  { %21 = vsyncpa [#allocation4 + $0x1], 0  ;;  %s1749_s29 = smov 0   ;;  %s1751_s30 = smov 0  }
   0x6   :  { %s1753_s15 = smov 0   ;;  %s1755_s16 = smov 0  }
   0x7 LB: > { %s1770_s17 = sadd.s32 4294967295, %s1669_s16   ;;  %s1464_s18 = sadd.s32 4294967294, %s1669_s16   ;;  %s1669_s16 = sphi %s1755_s16, %s2230_s16   ;;  %s1665_s15 = sphi %s1753_s15, %s2229_s15   ;;  %s1661_s30 = sphi %s1751_s30, %s2228_s30   ;;  %s1657_s29 = sphi %s1749_s29, %s2227_s29  }
   0x8   : > { %s1774_s19 = sadd.s32 1, %s1669_s16   ;;  %s338_s20 = sadd.s32 1, %s1665_s15 }
   0x9   : > { %s335_s21 = ssub.s32 %s1669_s16, %s1774_s19  ;;  %p348_p0 = scmp.ne.s32.totalorder %s1665_s15, %s1661_s30 }
   0xa   : > { %p336_p1 = scmp.eq.s32.totalorder %s335_s21, 0  ;;  %p349_p2 = scmp.eq.s32.totalorder %s1770_s17, 1 }
   0xb   : > { %p354_p3 = scmp.ne.s32.totalorder %s1661_s30, %s1657_s29  ;;  %p355_p4 = scmp.eq.s32.totalorder %s1464_s18, 1 }
   0xc   : > { %s1785_s22 = scalar_select %p336_p1, %s1665_s15, %s338_s20  }
   0xd   : > { %p1787_p5 = por %p349_p2, %p348_p0  ;;  %p1791_p6 = por %p355_p4, %p354_p3 }
   0xe   : > { %2207 = sst [smem:[#allocation6_spill]] %s1785_s22  ;;  %p1467_p7 = scmp.ge.s32.totalorder %s1669_s16, 1 }
   0xf   : > { %p427_p8 = scmp.lt.s32.totalorder %s1669_s16, 3 }
  0x11   : > { %p428_p9 = pnand %p1467_p7, %p427_p8 }
  0x12   : > { %s2210_s2 = sld [smem:[#allocation9_spill]] (!%p428_p9)  ;;  %s1469_s21 = sshll.u32 (!%p428_p9), %s1770_s17, 1 }
  0x13   : > { %431 = sbr.rel (%p428_p9) target bundleno = 1095 (0x447), region = 76  ;;  %p479_p10 = scmp.lt.s32.totalorder (!%p428_p9), %s1469_s21, 3 }
  0x14   : > { %s2211_s0 = sld [smem:[#allocation7_spill]] (!%p428_p9)  ;;  %s1517_s26 = sshll.u32 (!%p428_p9), %s1770_s17, 5 }
  0x15   : > { %s2212_s1 = sld [smem:[#allocation8_spill]] (!%p428_p9)  ;;  %s1389_s22 = scalar_lea.hbm (!%p428_p9), %s2202_s14, %s1517_s26 }
  0x18   : > { %v1472_v0 = vld [vmem:[%s2210_s2 + $0x8] sm:$0xff]  ;;  %v495_v1 = vld [vmem:[%s2210_s2] sm:$0xff]  ;;  %v1481_v2 = vld [vmem:[%s2210_s2 + $0x10] sm:$0xff]  ;;  %s2232_s21 = smov (!%p479_p10, %s1469_s21), 3  ;;  %vm2203_vm0 = vcmask 64512   ;;  %vm644_vm1 = vcmask 130048  }
  0x19   : > { %530 = vmatpush.msra.mxu0 %v1472_v0  ;;  %571 = vmatpush.msra.mxu1 %v495_v1  ;;  %s1519_s25 = smul.u32 24, %s2232_s21  ;;  %v698_v21 = vld [vmem:[%s2198_s10 + $0x8] sm:$0xff]  ;;  %v697_v22 = vld [vmem:[%s2198_s10] sm:$0xff]  ;;  %vm687_vm2 = vcmask 1041409   ;;  %vm692_vm3 = vcmask 1043459   ;;  %vm695_vm4 = vcmask 1041408  }
  0x1a   : > { %618 = vmatpush.msra.mxu2 %v1481_v2  ;;  %1518 = vmatpush.msra.mxu3 %v1481_v2  ;;  %v1562_v24 = vld [vmem:[%s2191_s3] ss:$0 sm:$0xff]  ;;  %vm907_vm8 = vcmask 122880  }
  0x1b   : > { %s483_s27 = scalar_lea.vmem %s2211_s0, %s1519_s25  ;;  %v722_v35 = vld [vmem:[%s2199_s11] sm:$0xff]  ;;  %s1885_s20 = scalar_lea.vmem %s2212_s1, %s2232_s21 }
  0x1c   : > { %v1813_v3 = vld [vmem:[%s483_s27 + $0x1] sm:$0xff]  ;;  %v1820_v7 = vld [vmem:[%s483_s27 + $0x9] sm:$0xff]  ;;  %v1827_v11 = vld [vmem:[%s483_s27 + $0x19] sm:$0xff]  ;;  %716 = vmatpush.msrb.mxu3 %v698_v21  ;;  %1139 = vmatpush.msrb.mxu2 %v698_v21  ;;  %s1392_s21 = sshll.u32 %s1389_s22, 4  ;;  %s1627_s22 = scalar_lea.hbm %s2202_s14, 64  ;;  %s1393_s21 = int_to_ptr.hbm [resolvable:$true] %s1392_s21 }
  0x1d   : > { %v491_v4 = vld [vmem:[%s483_s27] sm:$0xff]  ;;  %1473 = vmatmul.msk.f32.vlgmr.msra.gmra.mxu0 %vm2203_vm0, %v1813_v3  ;;  %v492_v8 = vld [vmem:[%s483_s27 + $0x8] sm:$0xff]  ;;  %v493_v12 = vld [vmem:[%s483_s27 + $0x18] sm:$0xff] }
  0x1e   : > { %v585_v5 = vld [vmem:[%s483_s27 + $0x2] sm:$0xff]  ;;  %1477 = vmatmul.msk.f32.vlgmr.msra.gmra.mxu1 %vm2203_vm0, %v491_v4  ;;  %v587_v6 = vld [vmem:[%s483_s27 + $0x1a] sm:$0xff]  ;;  %v586_v9 = vld [vmem:[%s483_s27 + $0xa] sm:$0xff]  ;;  %717 = vmatpush.msrb.mxu3 %v697_v22 }
  0x1f   : > { %1482 = vmatmul.msk.f32.vlgmr.msra.gmra.mxu2 %vm2203_vm0, %v585_v5  ;;  %1484 = vmatmul.msk.f32.vlgmr.msra.gmra.mxu3 %vm2203_vm0, %v587_v6  ;;  %v588_v10 = vld [vmem:[%s483_s27 + $0x22] sm:$0xff] }
  0x20   : > { %v1832_v13 = vld [vmem:[%s483_s27 + $0x21] sm:$0xff]  ;;  %1140 = vmatpush.msrb.mxu2 %v697_v22  ;;  %741 = vmatpush.msra.mxu3 %v722_v35 }
  0x21   : > { %v494_v14 = vld [vmem:[%s483_s27 + $0x20] sm:$0xff] }
  0x22   : > { %1164 = vmatpush.msra.mxu2 %v722_v35 }
  0x25   : > { %1474 = vmatmul.msk.f32.gmra.mxu0 %vm2203_vm0, %v1820_v7 }
  0x26   : > { %1478 = vmatmul.msk.f32.gmra.mxu1 %vm2203_vm0, %v492_v8 }
  0x27   : > { %1483 = vmatmul.msk.f32.gmra.mxu2 %vm2203_vm0, %v586_v9  ;;  %1485 = vmatmul.msk.f32.gmra.mxu3 %vm2203_vm0, %v588_v10 }
  0x2d   : > { %1475 = vmatmul.msk.f32.gmra.mxu0 %vm2203_vm0, %v1827_v11 }
  0x2e   : > { %1479 = vmatmul.msk.f32.gmra.mxu1 %vm2203_vm0, %v493_v12 }
  0x35   : > { %1476 = vmatmul.msk.f32.gmra.mxu0 %vm2203_vm0, %v1832_v13 }
  0x36   : > { %1480 = vmatmul.msk.f32.gmra.mxu1 %vm2203_vm0, %v494_v14 }
  0x9a   : > { %v532_v15 = vpop.f32.mrf.mxu0 }
  0x9b   : > { %v573_v16 = vpop.f32.mrf.mxu1 }
  0x9c   : > { %v574_v18 = vadd.f32 %v573_v16, %v532_v15 }
  0xa2   : > { %v620_v17 = vpop.f32.mrf.mxu2  ;;  %v535_v19 = vpop.f32.mrf.mxu0 }
  0xa3   : > { %v576_v20 = vpop.f32.mrf.mxu1  ;;  %v632_v23 = vadd.f32 %v620_v17, %v574_v18  ;;  %v626_v25 = vpop.f32.mrf.mxu3 }
  0xa4   : > { %v577_v27 = vadd.f32 %v576_v20, %v535_v19 }
  0xa5   : > { %v1846_v26 = vadd.f32 %v1562_v24, %v632_v23 }
  0xa7   : > { %v663_v33 = vmul.f32 %v1846_v26, %v1846_v26  ;;  %v645_v38 = vsel %vm644_vm1, %v1846_v26, 0.0 }
  0xa9   : > { %v667_v40 = vsel %vm644_vm1, %v663_v33, 0.0 }
  0xaa   : > { %v623_v28 = vpop.f32.mrf.mxu2  ;;  %v538_v30 = vpop.f32.mrf.mxu0 }
  0xab   : > { %v633_v29 = vadd.f32 %v623_v28, %v577_v27  ;;  %v579_v31 = vpop.f32.mrf.mxu1  ;;  %v629_v44 = vpop.f32.mrf.mxu3 }
  0xac   : > { %v580_v32 = vadd.f32 %v579_v31, %v538_v30 }
  0xad   : > { %v1850_v34 = vadd.f32 %v1562_v24, %v633_v29 }
  0xae   : > { %v634_v39 = vadd.f32 %v626_v25, %v580_v32 }
  0xaf   : > { %v646_v36 = vsel %vm644_vm1, %v1850_v34, 0.0  ;;  %v664_v37 = vmul.f32 %v1850_v34, %v1850_v34 }
  0xb0   : > { %v647_v41 = vadd.f32 %v646_v36, %v645_v38  ;;  %v1863_v47 = vadd.f32 %v1562_v24, %v634_v39 }
  0xb1   : > { %v668_v42 = vsel %vm644_vm1, %v664_v37, 0.0 }
  0xb2   : > { %v669_v43 = vadd.f32 %v668_v42, %v667_v40  ;;  %v541_v45 = vpop.f32.mrf.mxu0  ;;  %v648_v49 = vrot.slane %v647_v41, 4  ;;  %v665_v52 = vmul.f32 %v1863_v47, %v1863_v47  ;;  %v654_v56 = vsel %vm644_vm1, %v1863_v47, 0.0 }
  0xb3   : > { %v582_v46 = vpop.f32.mrf.mxu1 }
  0xb4   : > { %v583_v48 = vadd.f32 %v582_v46, %v541_v45  ;;  %v670_v50 = vrot.slane %v669_v43, 4  ;;  %v649_v54 = vadd.f32 %v648_v49, %v647_v41  ;;  %v676_v60 = vsel %vm644_vm1, %v665_v52, 0.0 }
  0xb6   : > { %v635_v51 = vadd.f32 %v629_v44, %v583_v48  ;;  %v671_v55 = vadd.f32 %v670_v50, %v669_v43  ;;  %v650_v62 = vrot.slane %v649_v54, 2 }
  0xb8   : > { %v1867_v53 = vadd.f32 %v1562_v24, %v635_v51  ;;  %v672_v63 = vrot.slane %v671_v55, 2  ;;  %v651_v5 = vadd.f32 %v650_v62, %v649_v54 }
  0xba   : > { %v655_v57 = vsel %vm644_vm1, %v1867_v53, 0.0  ;;  %v666_v58 = vmul.f32 %v1867_v53, %v1867_v53  ;;  %v673_v9 = vadd.f32 %v672_v63, %v671_v55  ;;  %v652_v14 = vrot.slane %v651_v5, 1  ;;  %v1563_v55 = vld [vmem:[%s2192_s4] ss:$0 sm:$0xff] }
  0xbb   : > { %v656_v59 = vadd.f32 %v655_v57, %v654_v56 }
  0xbc   : > { %v677_v61 = vsel %vm644_vm1, %v666_v58, 0.0  ;;  %v674_v16 = vrot.slane %v673_v9, 1  ;;  %v653_v20 = vadd.f32 %v652_v14, %v651_v5 }
  0xbd   : > { %v657_v0 = vrot.slane %v656_v59, 4  ;;  %v678_v1 = vadd.f32 %v677_v61, %v676_v60 }
  0xbe   : > { %v675_v21 = vadd.f32 %v674_v16, %v673_v9 }
  0xbf   : > { %v658_v2 = vadd.f32 %v657_v0, %v656_v59  ;;  %v679_v4 = vrot.slane %v678_v1, 4 }
  0xc1   : > { %v659_v6 = vrot.slane %v658_v2, 2  ;;  %v680_v8 = vadd.f32 %v679_v4, %v678_v1 }
  0xc3   : > { %v660_v10 = vadd.f32 %v659_v6, %v658_v2  ;;  %v681_v12 = vrot.slane %v680_v8, 2 }
  0xc5   : > { %v661_v15 = vrot.slane %v660_v10, 1  ;;  %v682_v17 = vadd.f32 %v681_v12, %v680_v8 }
  0xc7   : > { %v662_v18 = vadd.f32 %v661_v15, %v660_v10  ;;  %v683_v19 = vrot.slane %v682_v17, 1 }
  0xc9   : > { %v684_v22 = vadd.f32 %v683_v19, %v682_v17  ;;  %v688_v23 = vsel %vm687_vm2, %v662_v18, %v653_v20  ;;  %v921_v17 = vld [vmem:[%s2194_s6 + $0x8] sm:$0xff]  ;;  %v920_v19 = vld [vmem:[%s2194_s6] sm:$0xff] }
  0xca   : > { %v1499_v18 = vld [vmem:[%s2194_s6 + $0x28] sm:$0xff]  ;;  %996 = vmatpush.msrb.mxu0 %v921_v17 }
  0xcb   : > { %v693_v24 = vsel %vm692_vm3, %v684_v22, %v675_v21  ;;  %1044 = vmatpush.msrb.mxu1 %v1499_v18  ;;  %v1489_v22 = vld [vmem:[%s2194_s6 + $0x18] sm:$0xff] }
  0xcc   : > { %v696_v25 = vsel %vm695_vm4, %v688_v23, %v693_v24  ;;  %v1498_v23 = vld [vmem:[%s2194_s6 + $0x20] sm:$0xff]  ;;  %v1488_v24 = vld [vmem:[%s2194_s6 + $0x10] sm:$0xff]  ;;  %997 = vmatpush.msrb.mxu0 %v920_v19 }
  0xcd   : > { %1486 = vmatmul.msk.f32.vlgmr.msrb.gmra.mxu3 %vm644_vm1, %v696_v25  ;;  %v1671_v25 = vmov 0.0   ;;  %1045 = vmatpush.msrb.mxu1 %v1498_v23  ;;  %v1565_v19 = vld [vmem:[%s1885_s20] ss:$0 sm:$0xff] }
  0xce   : > { %908 = vst.msk [vmem:[#allocation2] sm:$0x1] %vm907_vm8, %v1671_v25  ;;  %955 = vmatpush.msrb.mxu3 %v1489_v22 }
  0xcf   : > { %909 = vst.msk [vmem:[#allocation2 + $0x18] sm:$0x1] %vm907_vm8, %v1671_v25 }
  0xd0   : > { %910 = vst.msk [vmem:[#allocation2 + $0x11] sm:$0x1] %vm907_vm8, %v1671_v25  ;;  %956 = vmatpush.msrb.mxu3 %v1488_v24 }
  0xd1   : > { %911 = vst.msk [vmem:[#allocation2 + $0x29] sm:$0x1] %vm907_vm8, %v1671_v25  ;;  %v1566_v25 = vld [vmem:[%s1885_s20 + $0x1] ss:$0 sm:$0xff]  ;;  %s475_s20 = sand.u32 1, %s1661_s30  }
  0xd2   : > { %s1468_s25 = sshll.u32 %s475_s20, 5  ;;  %s1377_s0 = scalar_lea.sflag [#allocation4], %s475_s20 }
  0xd3   : > { %s477_s28 = scalar_lea.vmem [#allocation3], %s1468_s25  ;;  %s1621_s25 = sshra.s32 %s1393_s21, 4  ;;  %s1622_s25 = int_to_ptr.hbm [resolvable:$true] %s1621_s25 }
  0xd4   : > { %s1390_s18 = sshll.u32 %s477_s28, 4  ;;  %s1623_s26 = scalar_lea.hbm %s1622_s25, 32  ;;  %s1391_s18 = int_to_ptr.vmem [resolvable:$true] %s1390_s18 }
  0xd5   : > { %p1624_p11 = scmp.ne.s32.totalorder %s1622_s25, %s1623_s26  ;;  %p1628_p0 = scmp.lt.s32.totalorder %s1622_s25, %s2202_s14 }
  0xd6   : > { %p1629_p1 = scmp.lt.s32.totalorder %s1627_s22, %s1623_s26 }
  0xd7   : > { %p1625_p12 = pnand %p1624_p11, %p1787_p5 }
  0xd8   : > { %p1630_p2 = por %p1629_p1, %p1628_p0 }
  0xd9   : > { %p1626_p13 = pneg %p1625_p12 }
  0xdb   : > { %p1631_p3 = pnand %p1630_p2, %p1626_p13 }
 0x150   : > { %v719_v27 = vpop.f32.mrf.mxu3 }
 0x151   : > { %1487 = vmatmul.msk.f32.vlgmr.msra.gmra.mxu3 %vm2203_vm0, %v719_v27 }
 0x1d4   : > { %v743_v28 = vpop.f32.mrf.mxu3 }
 0x1d5   : > { %v746_v29 = vmul.f32 0.03125, %v743_v28 }
 0x1d7   : > { %v747_v30 = vmul.f32 %v746_v29, %v746_v29  ;;  %v766_v42 = vrot.slane %v746_v29, 1  ;;  %v767_v43 = vperm.slane %v746_v29, 0 }
 0x1d9   : > { %v749_v31 = vrot.slane %v747_v30, 6  ;;  %v768_v44 = vperm.slane %v766_v42, 0  ;;  %v771_v45 = vsub.f32 %v1846_v26, %v767_v43  ;;  %v772_v46 = vsub.f32 %v1850_v34, %v767_v43  ;;  %v1564_v26 = vld [vmem:[%s2193_s5] ss:$0 sm:$0xff] }
 0x1db   : > { %v751_v32 = vsub.f32 %v746_v29, %v749_v31  ;;  %v773_v50 = vsub.f32 %v1863_v47, %v768_v44  ;;  %v774_v51 = vsub.f32 %v1867_v53, %v768_v44 }
 0x1dd   : > { %v752_v33 = vadd.f32 1e-05, %v751_v32 }
 0x1df   : > { %1571 = vrsqrt.f32 %v752_v33  ;;  %vm759_vm6 = vweird.f32 %v752_v33 }
 0x1e5   : > { %v1572_v35 = vpop.eup %1571 }
 0x1e6   : > { %v754_v36 = vmul.f32 %v1572_v35, %v752_v33  ;;  %vm760_vm5 = vweird.f32 %v1572_v35 }
 0x1e7   : > { %vm761_vm7 = vmor %vm759_vm6, %vm760_vm5 }
 0x1e8   : > { %v755_v37 = vmul.f32 %v1572_v35, %v754_v36 }
 0x1ea   : > { %v756_v38 = vmul.f32 0.5, %v755_v37 }
 0x1ec   : > { %v757_v39 = vsub.f32 1.5, %v756_v38 }
 0x1ee   : > { %v758_v40 = vmul.f32 %v1572_v35, %v757_v39 }
 0x1f0   : > { %v762_v41 = vsel %vm761_vm7, %v1572_v35, %v758_v40 }
 0x1f1   : > { %776 = vst [vmem:[#allocation1] sm:$0xff] %v762_v41 }
 0x1f8   : > { %v778_v48 = vld [vmem:[#allocation1 + $0x2] ss:$9 sm:$0xff] }
 0x1f9   : > { %v780_v49 = vld [vmem:[#allocation1 + $0x3] ss:$9 sm:$0xff]  ;;  %v781_v52 = vperm.slane %v778_v48, 0 }
 0x1fa   : > { %v782_v54 = vperm.slane %v780_v49, 0 }
 0x1fb   : > { %v785_v56 = vmul.f32 %v781_v52, %v771_v45  ;;  %v786_v57 = vmul.f32 %v781_v52, %v772_v46 }
 0x1fc   : > { %v787_v58 = vmul.f32 %v782_v54, %v773_v50  ;;  %v788_v59 = vmul.f32 %v782_v54, %v774_v51 }
 0x1fd   : > { %v792_v34 = vmul.f32 %v1563_v55, %v785_v56  ;;  %v793_v60 = vmul.f32 %v1563_v55, %v786_v57 }
 0x1fe   : > { %v794_v61 = vmul.f32 %v1563_v55, %v787_v58  ;;  %v795_v47 = vmul.f32 %v1563_v55, %v788_v59 }
 0x1ff   : > { %v1898_v62 = vadd.f32 %v1564_v26, %v792_v34  ;;  %v1900_v53 = vadd.f32 %v1564_v26, %v793_v60 }
 0x200   : > { %v1902_v63 = vadd.f32 %v1564_v26, %v794_v61  ;;  %v1904_v0 = vadd.f32 %v1564_v26, %v795_v47 }
 0x201   : > { %v803_v1 = vmul.f32 1.442695, %v1898_v62  ;;  %v805_v2 = vmul.f32 1.442695, %v1900_v53 }
 0x202   : > { %v807_v4 = vmul.f32 1.442695, %v1902_v63  ;;  %v809_v5 = vmul.f32 1.442695, %v1904_v0 }
 0x203   : > { %1573 = vpow2.f32 %v803_v1 }
 0x204   : > { %1575 = vpow2.f32 %v805_v2 }
 0x205   : > { %1577 = vpow2.f32 %v807_v4 }
 0x206   : > { %1579 = vpow2.f32 %v809_v5 }
 0x209   : > { %v1574_v6 = vpop.eup %1573 }
 0x20a   : > { %v1576_v8 = vpop.eup %1575  ;;  %v811_v9 = vadd.f32 2.0, %v1574_v6 }
 0x20b   : > { %v1578_v10 = vpop.eup %1577  ;;  %v812_v12 = vadd.f32 2.0, %v1576_v8 }
 0x20c   : > { %v1580_v14 = vpop.eup %1579  ;;  %v813_v15 = vadd.f32 2.0, %v1578_v10  ;;  %v1910_v16 = vmul.f32 %v1574_v6, %v811_v9 }
 0x20d   : > { %v814_v20 = vadd.f32 2.0, %v1580_v14  ;;  %v1921_v21 = vmul.f32 %v1576_v8, %v812_v12 }
 0x20e   : > { %v1933_v27 = vmul.f32 %v1578_v10, %v813_v15  ;;  %v819_v28 = vadd.f32 2.0, %v1910_v16 }
 0x20f   : > { %v1937_v29 = vmul.f32 %v1580_v14, %v814_v20  ;;  %v820_v30 = vadd.f32 2.0, %v1921_v21 }
 0x210   : > { %v821_v31 = vadd.f32 2.0, %v1933_v27  ;;  %1581 = vrcp.f32 %v819_v28  ;;  %v832_v33 = vand.u32 2147483647, %v819_v28  ;;  %v834_v35 = vand.u32 2147483648, %v819_v28 }
 0x211   : > { %v1944_v32 = vadd.f32 2.0, %v1937_v29  ;;  %1583 = vrcp.f32 %v820_v30  ;;  %vm828_vm9 = vweird.f32 %v819_v28  ;;  %vm843_vm10 = vweird.f32 %v820_v30 }
 0x212   : > { %1585 = vrcp.f32 %v821_v31  ;;  %v847_v41 = vand.u32 2147483647, %v820_v30  ;;  %v849_v42 = vand.u32 2147483648, %v820_v30  ;;  %vm1947_vm11 = vcmp.eq.f32.partialorder %v832_v33, 8.507059e+37 }
 0x213   : > { %1587 = vrcp.f32 %v1944_v32  ;;  %v835_v45 = vor.u32 1.1754944e-38, %v834_v35  ;;  %vm858_vm12 = vweird.f32 %v821_v31  ;;  %v862_v50 = vand.u32 2147483647, %v821_v31 }
 0x214   : > { %v864_v51 = vand.u32 2147483648, %v821_v31  ;;  %vm1952_vm15 = vcmp.eq.f32.partialorder %v847_v41, 8.507059e+37  ;;  %v850_v58 = vor.u32 1.1754944e-38, %v849_v42  ;;  %vm873_vm7 = vweird.f32 %v1944_v32 }
 0x215   : > { %v877_v61 = vand.u32 2147483647, %v1944_v32  ;;  %v879_v47 = vand.u32 2147483648, %v1944_v32 }
 0x216   : > { %v1582_v36 = vpop.eup %1581  ;;  %v865_v8 = vor.u32 1.1754944e-38, %v864_v51 }
 0x217   : > { %v1584_v37 = vpop.eup %1583  ;;  %v824_v38 = vmul.f32 %v1582_v36, %v819_v28  ;;  %vm829_vm13 = vweird.f32 %v1582_v36  ;;  %v880_v18 = vor.u32 1.1754944e-38, %v879_v47 }
 0x218   : > { %v1586_v39 = vpop.eup %1585  ;;  %v839_v40 = vmul.f32 %v1584_v37, %v820_v30  ;;  %vm844_vm14 = vweird.f32 %v1584_v37  ;;  %vm830_vm6 = vmor %vm828_vm9, %vm829_vm13  ;;  %vm863_vm13 = vcmp.eq.f32.partialorder %v862_v50, 8.507059e+37 }
 0x219   : > { %v825_v43 = vsub.f32 1.0, %v824_v38  ;;  %v854_v46 = vmul.f32 %v1586_v39, %v821_v31  ;;  %v1588_v48 = vpop.eup %1587  ;;  %vm859_vm5 = vweird.f32 %v1586_v39  ;;  %vm845_vm8 = vmor %vm843_vm10, %vm844_vm14  ;;  %vm889_vm14 = vcmp.gt.f32.partialorder %v1902_v63, 20.0 }
 0x21a   : > { %v840_v49 = vsub.f32 1.0, %v839_v40  ;;  %v869_v55 = vmul.f32 %v1588_v48, %v1944_v32  ;;  %vm874_vm0 = vweird.f32 %v1588_v48  ;;  %vm860_vm9 = vmor %vm858_vm12, %vm859_vm5  ;;  %vm887_vm12 = vcmp.gt.f32.partialorder %v1898_v62, 20.0 }
 0x21b   : > { %v826_v52 = vmul.f32 %v1582_v36, %v825_v43  ;;  %v855_v54 = vsub.f32 1.0, %v854_v46  ;;  %vm875_vm10 = vmor %vm873_vm7, %vm874_vm0  ;;  %vm888_vm0 = vcmp.gt.f32.partialorder %v1900_v53, 20.0  ;;  %vm2217_vm5 = vcmask 64512  }
 0x21c   : > { %v841_v56 = vmul.f32 %v1584_v37, %v840_v49  ;;  %v870_v34 = vsub.f32 1.0, %v869_v55  ;;  %vm2219_vm7 = vmmov %vm2217_vm5 }
 0x21d   : > { %v827_v59 = vadd.f32 %v1582_v36, %v826_v52  ;;  %v856_v26 = vmul.f32 %v1586_v39, %v855_v54 }
 0x21e   : > { %v842_v60 = vadd.f32 %v1584_v37, %v841_v56  ;;  %v871_v4 = vmul.f32 %v1588_v48, %v870_v34  ;;  %v1567_v56 = vld [vmem:[%s2195_s7] ss:$0 sm:$0xff] }
 0x21f   : > { %v831_v1 = vsel %vm830_vm6, %v1582_v36, %v827_v59  ;;  %v857_v2 = vadd.f32 %v1586_v39, %v856_v26  ;;  %vm2218_vm6 = vmmov %vm2217_vm5 }
 0x220   : > { %v836_v5 = vsel %vm1947_vm11, %v835_v45, %v831_v1  ;;  %v846_v6 = vsel %vm845_vm8, %v1584_v37, %v842_v60  ;;  %v872_v14 = vadd.f32 %v1588_v48, %v871_v4  ;;  %vm878_vm11 = vcmp.eq.f32.partialorder %v877_v61, 8.507059e+37 }
 0x221   : > { %v837_v9 = vmul.f32 %v836_v5, %v1910_v16  ;;  %v851_v10 = vsel %vm1952_vm15, %v850_v58, %v846_v6  ;;  %v861_v12 = vsel %vm860_vm9, %v1586_v39, %v857_v2  ;;  %vm890_vm15 = vcmp.gt.f32.partialorder %v1904_v0, 20.0 }
 0x222   : > { %v852_v15 = vmul.f32 %v851_v10, %v1921_v21  ;;  %v866_v17 = vsel %vm863_vm13, %v865_v8, %v861_v12  ;;  %v876_v22 = vsel %vm875_vm10, %v1588_v48, %v872_v14 }
 0x223   : > { %v867_v20 = vmul.f32 %v866_v17, %v1933_v27  ;;  %v883_v16 = vmul.f32 %v837_v9, %v1898_v62  ;;  %v881_v23 = vsel %vm878_vm11, %v880_v18, %v876_v22 }
 0x224   : > { %v884_v24 = vmul.f32 %v852_v15, %v1900_v53  ;;  %v882_v21 = vmul.f32 %v881_v23, %v1937_v29 }
 0x225   : > { %v885_v28 = vmul.f32 %v867_v20, %v1902_v63  ;;  %v891_v30 = vsel %vm887_vm12, %v1898_v62, %v883_v16 }
 0x226   : > { %v892_v27 = vsel %vm888_vm0, %v1900_v53, %v884_v24  ;;  %v903_v31 = vadd.f32 %v1565_v19, %v891_v30  ;;  %v886_v32 = vmul.f32 %v882_v21, %v1904_v0 }
 0x227   : > { %v893_v33 = vsel %vm889_vm14, %v1902_v63, %v885_v28  ;;  %v904_v35 = vadd.f32 %v1565_v19, %v892_v27 }
 0x228   : > { %v905_v36 = vadd.f32 %v1566_v25, %v893_v33  ;;  %912 = vst.msk [vmem:[#allocation2 + $0x1] sm:$0xff] %vm644_vm1, %v903_v31  ;;  %v894_v29 = vsel %vm890_vm15, %v1904_v0, %v886_v32 }
 0x229   : > { %913 = vst.msk [vmem:[#allocation2 + $0x9] sm:$0xff] %vm644_vm1, %v904_v35  ;;  %v906_v62 = vadd.f32 %v1566_v25, %v894_v29 }
 0x22a   : > { %914 = vst.msk [vmem:[#allocation2 + $0x19] sm:$0xff] %vm644_vm1, %v905_v36 }
 0x22b   : > { %915 = vst.msk [vmem:[#allocation2 + $0x21] sm:$0xff] %vm644_vm1, %v906_v62 }
 0x22f   : > { %v922_v53 = vld [vmem:[#allocation2 + $0x1] sm:$0xff] }
 0x230   : > { %v916_v37 = vld [vmem:[#allocation2] sm:$0xff]  ;;  %1490 = vmatmul.msk.f32.vlgmr.msrb.gmra.mxu3 %vm644_vm1, %v922_v53  ;;  %v923_v38 = vld [vmem:[#allocation2 + $0x9] sm:$0xff] }
 0x231   : > { %1494 = vmatmul.msk.f32.vlgmr.msrb.gmra.mxu0 %vm644_vm1, %v916_v37  ;;  %v1011_v63 = vld [vmem:[#allocation2 + $0x2] sm:$0xff]  ;;  %v1012_v0 = vld [vmem:[#allocation2 + $0xa] sm:$0xff]  ;;  %v924_v40 = vld [vmem:[#allocation2 + $0x19] sm:$0xff] }
 0x232   : > { %1500 = vmatmul.msk.f32.vlgmr.msrb.gmra.mxu1 %vm644_vm1, %v1011_v63  ;;  %v917_v39 = vld [vmem:[#allocation2 + $0x8] sm:$0xff]  ;;  %v918_v41 = vld [vmem:[#allocation2 + $0x18] sm:$0xff]  ;;  %v919_v44 = vld [vmem:[#allocation2 + $0x20] sm:$0xff] }
 0x233   : > { %v1013_v42 = vld [vmem:[#allocation2 + $0x1a] sm:$0xff]  ;;  %v1014_v45 = vld [vmem:[#allocation2 + $0x22] sm:$0xff] }
 0x234   : > { %v925_v43 = vld [vmem:[#allocation2 + $0x21] sm:$0xff] }
 0x238   : > { %1491 = vmatmul.msk.f32.gmra.mxu3 %vm644_vm1, %v923_v38 }
 0x239   : > { %1495 = vmatmul.msk.f32.gmra.mxu0 %vm644_vm1, %v917_v39 }
 0x23a   : > { %1501 = vmatmul.msk.f32.gmra.mxu1 %vm644_vm1, %v1012_v0 }
 0x240   : > { %1492 = vmatmul.msk.f32.gmra.mxu3 %vm644_vm1, %v924_v40 }
 0x241   : > { %1496 = vmatmul.msk.f32.gmra.mxu0 %vm644_vm1, %v918_v41 }
 0x242   : > { %1502 = vmatmul.msk.f32.gmra.mxu1 %vm644_vm1, %v1013_v42 }
 0x248   : > { %1493 = vmatmul.msk.f32.gmra.mxu3 %vm644_vm1, %v925_v43 }
 0x249   : > { %1497 = vmatmul.msk.f32.gmra.mxu0 %vm644_vm1, %v919_v44 }
 0x24a   : > { %1503 = vmatmul.msk.f32.gmra.mxu1 %vm644_vm1, %v1014_v45 }
 0x2ae   : > { %v999_v46 = vpop.f32.mrf.mxu0 }
 0x2af   : > { %v1047_v48 = vpop.f32.mrf.mxu1 }
 0x2b3   : > { %v958_v49 = vpop.f32.mrf.mxu3 }
 0x2b4   : > { %v1000_v51 = vadd.f32 %v999_v46, %v958_v49 }
 0x2b6   : > { %v1002_v50 = vpop.f32.mrf.mxu0  ;;  %v1059_v55 = vadd.f32 %v1047_v48, %v1000_v51 }
 0x2b7   : > { %v1050_v52 = vpop.f32.mrf.mxu1 }
 0x2b8   : > { %v2005_v59 = vadd.f32 %v1567_v56, %v1059_v55 }
 0x2ba   : > { %v1089_v1 = vmul.f32 %v2005_v59, %v2005_v59  ;;  %v1071_v6 = vsel %vm644_vm1, %v2005_v59, 0.0 }
 0x2bb   : > { %v961_v54 = vpop.f32.mrf.mxu3 }
 0x2bc   : > { %v1003_v57 = vadd.f32 %v1002_v50, %v961_v54  ;;  %v1093_v8 = vsel %vm644_vm1, %v1089_v1, 0.0 }
 0x2be   : > { %v1060_v58 = vadd.f32 %v1050_v52, %v1003_v57  ;;  %v1005_v34 = vpop.f32.mrf.mxu0 }
 0x2bf   : > { %v1053_v61 = vpop.f32.mrf.mxu1 }
 0x2c0   : > { %v2007_v26 = vadd.f32 %v1567_v56, %v1060_v58 }
 0x2c2   : > { %v1090_v60 = vmul.f32 %v2007_v26, %v2007_v26  ;;  %v1072_v4 = vsel %vm644_vm1, %v2007_v26, 0.0 }
 0x2c3   : > { %v964_v47 = vpop.f32.mrf.mxu3  ;;  %v1073_v10 = vadd.f32 %v1072_v4, %v1071_v6 }
 0x2c4   : > { %v1006_v2 = vadd.f32 %v1005_v34, %v964_v47  ;;  %v1094_v5 = vsel %vm644_vm1, %v1090_v60, 0.0 }
 0x2c5   : > { %v1095_v12 = vadd.f32 %v1094_v5, %v1093_v8  ;;  %v1074_v19 = vrot.slane %v1073_v10, 4 }
 0x2c6   : > { %v1061_v9 = vadd.f32 %v1053_v61, %v1006_v2  ;;  %v1008_v14 = vpop.f32.mrf.mxu0 }
 0x2c7   : > { %v1096_v20 = vrot.slane %v1095_v12, 4  ;;  %v1056_v22 = vpop.f32.mrf.mxu1  ;;  %v1075_v25 = vadd.f32 %v1074_v19, %v1073_v10 }
 0x2c8   : > { %v2019_v17 = vadd.f32 %v1567_v56, %v1061_v9 }
 0x2c9   : > { %v1097_v21 = vadd.f32 %v1096_v20, %v1095_v12  ;;  %v1076_v35 = vrot.slane %v1075_v25, 2 }
 0x2ca   : > { %v1091_v23 = vmul.f32 %v2019_v17, %v2019_v17  ;;  %v1080_v28 = vsel %vm644_vm1, %v2019_v17, 0.0 }
 0x2cb   : > { %v967_v15 = vpop.f32.mrf.mxu3  ;;  %v1098_v62 = vrot.slane %v1097_v21, 2  ;;  %v1077_v39 = vadd.f32 %v1076_v35, %v1075_v25 }
 0x2cc   : > { %v1009_v18 = vadd.f32 %v1008_v14, %v967_v15  ;;  %v1102_v32 = vsel %vm644_vm1, %v1091_v23, 0.0 }
 0x2cd   : > { %v1099_v0 = vadd.f32 %v1098_v62, %v1097_v21  ;;  %v1078_v42 = vrot.slane %v1077_v39, 1 }
 0x2ce   : > { %v1062_v16 = vadd.f32 %v1056_v22, %v1009_v18 }
 0x2cf   : > { %v1100_v44 = vrot.slane %v1099_v0, 1  ;;  %v1079_v49 = vadd.f32 %v1078_v42, %v1077_v39 }
 0x2d0   : > { %v2023_v24 = vadd.f32 %v1567_v56, %v1062_v16  ;;  %v1322_v56 = vld [vmem:[%s2200_s12] sm:$0xff] }
 0x2d1   : > { %v1101_v50 = vadd.f32 %v1100_v44, %v1099_v0  ;;  %v1568_v16 = vld [vmem:[%s2196_s8] ss:$0 sm:$0xff] }
 0x2d2   : > { %v1081_v30 = vsel %vm644_vm1, %v2023_v24, 0.0  ;;  %v1092_v27 = vmul.f32 %v2023_v24, %v2023_v24 }
 0x2d3   : > { %v1082_v31 = vadd.f32 %v1081_v30, %v1080_v28 }
 0x2d4   : > { %v1103_v33 = vsel %vm644_vm1, %v1092_v27, 0.0 }
 0x2d5   : > { %v1083_v36 = vrot.slane %v1082_v31, 4  ;;  %v1104_v29 = vadd.f32 %v1103_v33, %v1102_v32 }
 0x2d7   : > { %v1084_v53 = vadd.f32 %v1083_v36, %v1082_v31  ;;  %v1105_v37 = vrot.slane %v1104_v29, 4 }
 0x2d9   : > { %v1085_v63 = vrot.slane %v1084_v53, 2  ;;  %v1106_v38 = vadd.f32 %v1105_v37, %v1104_v29 }
 0x2db   : > { %v1086_v40 = vadd.f32 %v1085_v63, %v1084_v53  ;;  %v1107_v41 = vrot.slane %v1106_v38, 2 }
 0x2dd   : > { %v1087_v43 = vrot.slane %v1086_v40, 1  ;;  %v1108_v45 = vadd.f32 %v1107_v41, %v1106_v38 }
 0x2df   : > { %v1088_v46 = vadd.f32 %v1087_v43, %v1086_v40  ;;  %v1109_v48 = vrot.slane %v1108_v45, 1 }
 0x2e1   : > { %v1110_v51 = vadd.f32 %v1109_v48, %v1108_v45  ;;  %v1113_v52 = vsel %vm687_vm2, %v1088_v46, %v1079_v49  ;;  %vm2220_vm2 = vmmov %vm2217_vm5 }
 0x2e3   : > { %v1117_v54 = vsel %vm692_vm3, %v1110_v51, %v1101_v50  ;;  %vm2221_vm3 = vmmov %vm2220_vm2 }
 0x2e4   : > { %v1119_v55 = vsel %vm695_vm4, %v1113_v52, %v1117_v54  ;;  %v2091_v54 = vld [vmem:[%s2201_s13] ss:$0 sm:$0xff] }
 0x2e5   : > { %1504 = vmatmul.msk.f32.vlgmr.msrb.gmra.mxu2 %vm644_vm1, %v1119_v55 }
 0x2e6   : > { %1354 = vmatpush.msrb.mxu2 %v1322_v56 }
 0x368   : > { %v1142_v57 = vpop.f32.mrf.mxu2 }
 0x369   : > { %1505 = vmatmul.msk.f32.vlgmr.msra.gmra.mxu2 %vm2217_vm5, %v1142_v57 }
 0x371   : > { %1506 = vmatmul.msk.f32.vlgmr.msrb.gmra.mxu2 %vm2218_vm6, %v1813_v3 }
 0x379   : > { %1507 = vmatmul.msk.f32.gmra.mxu2 %vm2219_vm7, %v1820_v7 }
 0x381   : > { %1508 = vmatmul.msk.f32.gmra.mxu2 %vm2220_vm2, %v1827_v11 }
 0x389   : > { %1509 = vmatmul.msk.f32.gmra.mxu2 %vm2221_vm3, %v1832_v13 }
 0x3ec   : > { %v1166_v58 = vpop.f32.mrf.mxu2 }
 0x3ed   : > { %v1169_v34 = vmul.f32 0.03125, %v1166_v58 }
 0x3ef   : > { %v1170_v60 = vmul.f32 %v1169_v34, %v1169_v34  ;;  %v1189_v8 = vrot.slane %v1169_v34, 1  ;;  %v1190_v13 = vperm.slane %v1169_v34, 0 }
 0x3f1   : > { %v1172_v61 = vrot.slane %v1170_v60, 6  ;;  %v1191_v9 = vperm.slane %v1189_v8, 0  ;;  %v1194_v10 = vsub.f32 %v2005_v59, %v1190_v13  ;;  %v1195_v12 = vsub.f32 %v2007_v26, %v1190_v13  ;;  %v1569_v59 = vld [vmem:[%s2197_s9] ss:$0 sm:$0xff] }
 0x3f3   : > { %v1174_v47 = vsub.f32 %v1169_v34, %v1172_v61  ;;  %v1196_v18 = vsub.f32 %v2019_v17, %v1191_v9  ;;  %v1197_v19 = vsub.f32 %v2023_v24, %v1191_v9 }
 0x3f4   : > { %v1356_v53 = vpop.f32.mrf.mxu2 }
 0x3f5   : > { %v1175_v1 = vadd.f32 1e-05, %v1174_v47 }
 0x3f7   : > { %1589 = vrsqrt.f32 %v1175_v1  ;;  %vm1182_vm8 = vweird.f32 %v1175_v1 }
 0x3fc   : > { %v1359_v50 = vpop.f32.mrf.mxu2 }
 0x3fd   : > { %v1590_v2 = vpop.eup %1589 }
 0x3fe   : > { %v1177_v4 = vmul.f32 %v1590_v2, %v1175_v1  ;;  %vm1183_vm4 = vweird.f32 %v1590_v2  ;;  %v2095_v1 = vadd.f32 %v2091_v54, %v1356_v53 }
 0x3ff   : > { %vm1184_vm9 = vmor %vm1182_vm8, %vm1183_vm4 }
 0x400   : > { %v1178_v5 = vmul.f32 %v1590_v2, %v1177_v4  ;;  %v2098_v4 = vadd.f32 %v2091_v54, %v1359_v50 }
 0x402   : > { %v1179_v3 = vmul.f32 0.5, %v1178_v5 }
 0x404   : > { %v1180_v6 = vsub.f32 1.5, %v1179_v3 }
 0x406   : > { %v1181_v7 = vmul.f32 %v1590_v2, %v1180_v6 }
 0x408   : > { %v1185_v11 = vsel %vm1184_vm9, %v1590_v2, %v1181_v7  ;;  %v2104_v7 = vpop.f32.mrf.mxu2 }
 0x409   : > { %1199 = vst [vmem:[#allocation1] sm:$0xff] %v1185_v11 }
 0x410   : > { %v1201_v14 = vld [vmem:[#allocation1 + $0x2] ss:$9 sm:$0xff] }
 0x411   : > { %v1203_v15 = vld [vmem:[#allocation1 + $0x3] ss:$9 sm:$0xff]  ;;  %v1204_v20 = vperm.slane %v1201_v14, 0 }
 0x412   : > { %v1205_v22 = vperm.slane %v1203_v15, 0 }
 0x413   : > { %v1208_v23 = vmul.f32 %v1204_v20, %v1194_v10  ;;  %v1209_v25 = vmul.f32 %v1204_v20, %v1195_v12 }
 0x414   : > { %v1210_v21 = vmul.f32 %v1205_v22, %v1196_v18  ;;  %v1211_v28 = vmul.f32 %v1205_v22, %v1197_v19 }
 0x415   : > { %v1215_v26 = vmul.f32 %v1568_v16, %v1208_v23  ;;  %v1216_v30 = vmul.f32 %v1568_v16, %v1209_v25 }
 0x416   : > { %v1217_v27 = vmul.f32 %v1568_v16, %v1210_v21  ;;  %v1218_v17 = vmul.f32 %v1568_v16, %v1211_v28 }
 0x417   : > { %v2059_v31 = vadd.f32 %v1569_v59, %v1215_v26  ;;  %v2061_v24 = vadd.f32 %v1569_v59, %v1216_v30 }
 0x418   : > { %v2063_v32 = vadd.f32 %v1569_v59, %v1217_v27  ;;  %v2065_v33 = vadd.f32 %v1569_v59, %v1218_v17 }
 0x419   : > { %v1226_v35 = vmul.f32 1.442695, %v2059_v31  ;;  %v1228_v36 = vmul.f32 1.442695, %v2061_v24  ;;  %vm1310_vm0 = vcmp.gt.f32.partialorder %v2059_v31, 20.0 }
 0x41a   : > { %v1230_v29 = vmul.f32 1.442695, %v2063_v32  ;;  %v1232_v62 = vmul.f32 1.442695, %v2065_v33 }
 0x41b   : > { %1591 = vpow2.f32 %v1226_v35 }
 0x41c   : > { %1593 = vpow2.f32 %v1228_v36 }
 0x41d   : > { %1595 = vpow2.f32 %v1230_v29 }
 0x41e   : > { %1597 = vpow2.f32 %v1232_v62 }
 0x421   : > { %v1592_v37 = vpop.eup %1591 }
 0x422   : > { %v1594_v63 = vpop.eup %1593  ;;  %v1234_v38 = vadd.f32 2.0, %v1592_v37 }
 0x423   : > { %v1596_v39 = vpop.eup %1595  ;;  %v1235_v0 = vadd.f32 2.0, %v1594_v63 }
 0x424   : > { %v1598_v40 = vpop.eup %1597  ;;  %v2071_v41 = vmul.f32 %v1592_v37, %v1234_v38  ;;  %v1236_v42 = vadd.f32 2.0, %v1596_v39 }
 0x425   : > { %v2073_v43 = vmul.f32 %v1594_v63, %v1235_v0  ;;  %v1237_v44 = vadd.f32 2.0, %v1598_v40 }
 0x426   : > { %v1242_v45 = vadd.f32 2.0, %v2071_v41  ;;  %v2076_v46 = vmul.f32 %v1596_v39, %v1236_v42 }
 0x427   : > { %v1243_v48 = vadd.f32 2.0, %v2073_v43  ;;  %v2079_v49 = vmul.f32 %v1598_v40, %v1237_v44 }
 0x428   : > { %1599 = vrcp.f32 %v1242_v45  ;;  %v2082_v51 = vadd.f32 2.0, %v2076_v46  ;;  %v1255_v56 = vand.u32 2147483647, %v1242_v45  ;;  %v1257_v34 = vand.u32 2147483648, %v1242_v45 }
 0x429   : > { %1601 = vrcp.f32 %v1243_v48  ;;  %v2085_v52 = vadd.f32 2.0, %v2079_v49  ;;  %v1270_v61 = vand.u32 2147483647, %v1243_v48  ;;  %v1272_v2 = vand.u32 2147483648, %v1243_v48 }
 0x42a   : > { %1603 = vrcp.f32 %v2082_v51  ;;  %vm1251_vm13 = vweird.f32 %v1242_v45  ;;  %vm2100_vm10 = vcmp.eq.f32.partialorder %v1255_v56, 8.507059e+37  ;;  %vm1266_vm11 = vweird.f32 %v1243_v48 }
 0x42b   : > { %1605 = vrcp.f32 %v2085_v52  ;;  %v1258_v13 = vor.u32 1.1754944e-38, %v1257_v34  ;;  %vm2108_vm15 = vcmp.eq.f32.partialorder %v1270_v61, 8.507059e+37  ;;  %v1273_v18 = vor.u32 1.1754944e-38, %v1272_v2 }
 0x42c   : > { %v1285_v20 = vand.u32 2147483647, %v2082_v51  ;;  %v1287_v16 = vand.u32 2147483648, %v2082_v51  ;;  %v1300_v25 = vand.u32 2147483647, %v2085_v52  ;;  %v1302_v59 = vand.u32 2147483648, %v2085_v52 }
 0x42d   : > { %vm1281_vm3 = vweird.f32 %v2082_v51  ;;  %vm1296_vm8 = vweird.f32 %v2085_v52 }
 0x42e   : > { %v1600_v55 = vpop.eup %1599  ;;  %v1288_v62 = vor.u32 1.1754944e-38, %v1287_v16  ;;  %vm1286_vm9 = vcmp.eq.f32.partialorder %v1285_v20, 8.507059e+37  ;;  %v1303_v38 = vor.u32 1.1754944e-38, %v1302_v59 }
 0x42f   : > { %v1602_v57 = vpop.eup %1601  ;;  %v1247_v58 = vmul.f32 %v1600_v55, %v1242_v45  ;;  %vm1252_vm12 = vweird.f32 %v1600_v55 }
 0x430   : > { %v1262_v60 = vmul.f32 %v1602_v57, %v1243_v48  ;;  %v1604_v5 = vpop.eup %1603  ;;  %vm1267_vm14 = vweird.f32 %v1602_v57  ;;  %vm1253_vm5 = vmor %vm1251_vm13, %vm1252_vm12  ;;  %vm1312_vm12 = vcmp.gt.f32.partialorder %v2063_v32, 20.0 }
 0x431   : > { %v1248_v47 = vsub.f32 1.0, %v1247_v58  ;;  %v1606_v11 = vpop.eup %1605  ;;  %v1277_v9 = vmul.f32 %v1604_v5, %v2082_v51  ;;  %vm1268_vm6 = vmor %vm1266_vm11, %vm1267_vm14  ;;  %vm1282_vm7 = vweird.f32 %v1604_v5  ;;  %vm1311_vm11 = vcmp.gt.f32.partialorder %v2061_v24, 20.0 }
 0x432   : > { %v1263_v6 = vsub.f32 1.0, %v1262_v60  ;;  %v1292_v14 = vmul.f32 %v1606_v11, %v2085_v52  ;;  %vm1297_vm2 = vweird.f32 %v1606_v11  ;;  %vm1283_vm4 = vmor %vm1281_vm3, %vm1282_vm7 }
 0x433   : > { %v1249_v8 = vmul.f32 %v1600_v55, %v1248_v47  ;;  %v1278_v19 = vsub.f32 1.0, %v1277_v9  ;;  %vm1298_vm13 = vmor %vm1296_vm8, %vm1297_vm2 }
 0x434   : > { %v1264_v10 = vmul.f32 %v1602_v57, %v1263_v6  ;;  %v1293_v23 = vsub.f32 1.0, %v1292_v14 }
 0x435   : > { %v1250_v15 = vadd.f32 %v1600_v55, %v1249_v8  ;;  %v1279_v28 = vmul.f32 %v1604_v5, %v1278_v19 }
 0x436   : > { %v1265_v22 = vadd.f32 %v1602_v57, %v1264_v10  ;;  %v1294_v27 = vmul.f32 %v1606_v11, %v1293_v23 }
 0x437   : > { %v1254_v21 = vsel %vm1253_vm5, %v1600_v55, %v1250_v15  ;;  %v1280_v36 = vadd.f32 %v1604_v5, %v1279_v28 }
 0x438   : > { %v1259_v26 = vsel %vm2100_vm10, %v1258_v13, %v1254_v21  ;;  %v1269_v30 = vsel %vm1268_vm6, %v1602_v57, %v1265_v22  ;;  %v1295_v53 = vadd.f32 %v1606_v11, %v1294_v27  ;;  %vm1301_vm10 = vcmp.eq.f32.partialorder %v1300_v25, 8.507059e+37 }
 0x439   : > { %v1260_v17 = vmul.f32 %v1259_v26, %v2071_v41  ;;  %v1274_v35 = vsel %vm2108_vm15, %v1273_v18, %v1269_v30  ;;  %v1284_v63 = vsel %vm1283_vm4, %v1604_v5, %v1280_v36  ;;  %v1365_v41 = vpop.f32.mrf.mxu2 }
 0x43a   : > { %v1275_v29 = vmul.f32 %v1274_v35, %v2073_v43  ;;  %v1289_v0 = vsel %vm1286_vm9, %v1288_v62, %v1284_v63  ;;  %v1299_v40 = vsel %vm1298_vm13, %v1606_v11, %v1295_v53  ;;  %v1366_v55 = vadd.f32 %v2091_v54, %v1365_v41 }
 0x43b   : > { %v1306_v37 = vmul.f32 %v1260_v17, %v2059_v31  ;;  %v1290_v43 = vmul.f32 %v1289_v0, %v2076_v46  ;;  %v1304_v44 = vsel %vm1301_vm10, %v1303_v38, %v1299_v40 }
 0x43c   : > { %v1307_v39 = vmul.f32 %v1275_v29, %v2061_v24  ;;  %v1305_v50 = vmul.f32 %v1304_v44, %v2079_v49 }
 0x43d   : > { %v1314_v42 = vsel %vm1310_vm0, %v2059_v31, %v1306_v37  ;;  %v1308_v52 = vmul.f32 %v1290_v43, %v2063_v32  ;;  %v1363_v31 = vadd.f32 %v2091_v54, %v2104_v7  ;;  %vm1313_vm0 = vcmp.gt.f32.partialorder %v2065_v33, 20.0 }
 0x43e   : > { %v1368_v45 = vadd.f32 %v2095_v1, %v1314_v42  ;;  %v1315_v48 = vsel %vm1311_vm11, %v2061_v24, %v1307_v39  ;;  %v1309_v24 = vmul.f32 %v1305_v50, %v2065_v33 }
 0x43f   : > { %v1369_v51 = vadd.f32 %v2098_v4, %v1315_v48  ;;  %v1316_v46 = vsel %vm1312_vm12, %v2063_v32, %v1308_v52 }
 0x440   : > { %1372 = vst.msk [vmem:[%s477_s28] sm:$0xff] %vm644_vm1, %v1368_v45  ;;  %v1370_v49 = vadd.f32 %v1363_v31, %v1316_v46  ;;  %v1317_v56 = vsel %vm1313_vm0, %v2065_v33, %v1309_v24 }
 0x441   : > { %1373 = vst.msk [vmem:[%s477_s28 + $0x8] sm:$0xff] %vm644_vm1, %v1369_v51  ;;  %v1371_v57 = vadd.f32 %v1366_v55, %v1317_v56 }
 0x442   : > { %1374 = vst.msk [vmem:[%s477_s28 + $0x10] sm:$0xff] %vm644_vm1, %v1370_v49 }
 0x443   : > { %1375 = vst.msk [vmem:[%s477_s28 + $0x18] sm:$0xff] %vm644_vm1, %v1371_v57 }
 0x444   : > { %1634 = shalt.err (!%p1631_p3)
}
 0x445   : > { %s1672_s20 = smov 128   ;;  %s1673_s28 = smov 8  }
 0x446   : > { %1520 = dma.vmem_to_hbm [thread:$0]  (%p1787_p5), %s1391_s18, 512, %s1393_s21, %s1377_s0, %s1672_s20, %s1672_s20, %s1673_s28  }
 0x447 PF: > { %p1526_p4 = scmp.ge.s32.totalorder %s1669_s16, 2  ;;  %s1407_s17 = sand.u32 1, %s1657_s29  }
 0x448   : > { %s1408_s1 = scalar_lea.sflag [#allocation4], %s1407_s17 }
 0x449   : > { %p1523_p7 = pnand %p1526_p4, %p1791_p6 }
 0x44b   : > { %p1524_p8 = pneg %p1523_p7 }
 0x44d   : > { %1652 = dma.done.wait (%p1524_p8), %s1408_s1, 512  }
 0x44e   : > { %1654 = vsyncadd (%p1524_p8), %s1408_s1, 4294966784  ;;  %s2226_s2 = sld [smem:[#allocation6_spill]]  ;;  %p24_p9 = scmp.ge.s32.totalorder %s1774_s19, 4  }
 0x44f   : > { %s2227_s29 = smov %s1661_s30  ;;  %s2228_s30 = smov %s1665_s15 }
 0x450   : > { %s2230_s16 = smov %s1774_s19  ;;  %26 = sbr.rel (!%p24_p9) target bundleno = 7 (0x7), region = 122 }
 0x454   : > { %s2229_s15 = smov %s2226_s2 }
 0x455   :  { %1414 = vsyncpa [#allocation4], 1 }
 0x456   :  { %1416 = vsyncpa [#allocation4 + $0x1], 1 }

</bundles_post_ra>
